<compile_context>
chip_gen: v5e
topology: v5e:2x2
jax: 0.10.0
libtpu: 0.0.40
codegen_flags: <defaults>
</compile_context>

<pallas_src>
import functools

import jax
import jax.numpy as jnp
from jax.experimental import pallas as pl
from jax.experimental.pallas import tpu as pltpu


# -----------------------------------------------------------------------------
# Kernel 1: fused decoder step + V-tiled output projection with online lse.
# -----------------------------------------------------------------------------
def _decoder_step_kernel(
    emb_ref,       # (B, H)    f32  embedded tokens (dropout1 == identity, eval)
    h_ref,         # (B, H)    f32  hidden[0]
    c_ref,         # (B, H)    f32  cell_state[0]
    enc_ref,       # (B, L, H) f32  encoder_outputs
    w_attn_ref,    # (2H, L)   cdt  attn weight (rows [0:H] -> emb, [H:2H] -> hidden)
    b_attn_ref,    # (1, L)    f32
    w_comb_ref,    # (2H, H)   cdt  attn_combine weight (rows [0:H] -> emb, [H:2H] -> attn_applied)
    b_comb_ref,    # (1, H)    f32
    w_ih_ref,      # (4, H, H) cdt  LSTM input->gate weights, gate order (i, f, g, o)
    w_hh_ref,      # (4, H, H) cdt  LSTM hidden->gate weights
    b_lstm_ref,    # (4, 1, H) f32  b_ih + b_hh per gate
    w_out_ref,     # (H, TILE_V) cdt   (V-tiled)
    b_out_ref,     # (1, TILE_V) f32   (V-tiled)
    # outputs
    logits_ref,    # (B, TILE_V) f32  raw output-projection logits (V-tiled)
    lse_ref,       # (B, 1)      f32  logsumexp over the full vocab
    h_out_ref,     # (B, H)      f32  new hidden
    c_out_ref,     # (B, H)      f32  new cell
    attn_ref,      # (B, L)      f32  attention weights
    # scratch
    h_sc,          # (B, H) cdt  new hidden, pre-cast for the projection matmuls
    m_sc,          # (B, 1) f32  running max
    s_sc,          # (B, 1) f32  running sum of exp
):
    j = pl.program_id(0)
    cdt = w_out_ref.dtype              # matmul compute dtype (e.g. bfloat16)

    # --- main decoder step: run once, on the first vocab tile --------------
    @pl.when(j == 0)
    def _main_step():
        emb = emb_ref[...]
        h = h_ref[...]
        c = c_ref[...]
        H = emb.shape[1]
        emb_c = emb.astype(cdt)
        h_c = h.astype(cdt)

        # attn_weights = softmax(attn(cat(embedded, hidden[0])), dim=1)
        # concat replaced by split matmuls against static weight-ref slices.
        attn_logits = (
            jnp.dot(emb_c, w_attn_ref[:H, :], preferred_element_type=jnp.float32)
            + jnp.dot(h_c, w_attn_ref[H:, :], preferred_element_type=jnp.float32)
            + b_attn_ref[...]
        )                                                           # (B, L) f32
        mx = jnp.max(attn_logits, axis=1, keepdims=True)
        e = jnp.exp(attn_logits - mx)
        denom = jnp.sum(e, axis=1, keepdims=True)
        attn_w = e * pl.reciprocal(denom, approx=True)              # EUP slot
        attn_ref[...] = attn_w

        # attn_applied = bmm(attn_w.unsqueeze(1), encoder_outputs).squeeze(1)
        # batched MXU contraction over L (no (B,L,H) VPU intermediate + XLU sum).
        attn_applied = jnp.einsum(
            "bql,blh->bqh",
            attn_w[:, None, :].astype(cdt),
            enc_ref[...].astype(cdt),
            preferred_element_type=jnp.float32,
        )[:, 0, :]                                                  # (B, H) f32

        # output = relu(attn_combine(cat(embedded, attn_applied)))  (dropout2 == id)
        comb = (
            jnp.dot(emb_c, w_comb_ref[:H, :], preferred_element_type=jnp.float32)
            + jnp.dot(attn_applied.astype(cdt), w_comb_ref[H:, :],
                      preferred_element_type=jnp.float32)
            + b_comb_ref[...]
        )
        x = jnp.maximum(comb, 0.0).astype(cdt)                      # (B, H)

        # One LSTM step (seq_len == 1); per-gate weight blocks (i, f, g, o).
        def gate(k):
            return (
                jnp.dot(x, w_ih_ref[k], preferred_element_type=jnp.float32)
                + jnp.dot(h_c, w_hh_ref[k], preferred_element_type=jnp.float32)
                + b_lstm_ref[k]
            )

        i_g = jax.nn.sigmoid(gate(0))
        f_g = jax.nn.sigmoid(gate(1))
        g_g = jnp.tanh(gate(2))
        o_g = jax.nn.sigmoid(gate(3))
        c_new = f_g * c + i_g * g_g
        h_new = o_g * jnp.tanh(c_new)
        c_out_ref[...] = c_new
        h_out_ref[...] = h_new
        h_sc[...] = h_new.astype(cdt)

        # init online logsumexp state
        m_sc[...] = jnp.full_like(m_sc, -jnp.inf)
        s_sc[...] = jnp.zeros_like(s_sc)

    # --- every vocab tile: output projection + online logsumexp ------------
    logits = (
        jnp.dot(h_sc[...], w_out_ref[...], preferred_element_type=jnp.float32)
        + b_out_ref[...]
    )                                                               # (B, TILE_V)
    logits_ref[...] = logits

    m_prev = m_sc[...]
    m_new = jnp.maximum(m_prev, jnp.max(logits, axis=1, keepdims=True))
    s_sc[...] = s_sc[...] * jnp.exp(m_prev - m_new) + jnp.sum(
        jnp.exp(logits - m_new), axis=1, keepdims=True)
    m_sc[...] = m_new

    @pl.when(j == pl.num_programs(0) - 1)
    def _finalize():
        lse_ref[...] = m_sc[...] + jnp.log(s_sc[...])


# -----------------------------------------------------------------------------
# Kernel 2: log_softmax normalization, tiled over V (lane-dense stores).
# -----------------------------------------------------------------------------
def _log_softmax_norm_kernel(logits_ref, lse_ref, logp_ref):
    logp_ref[...] = logits_ref[...] - lse_ref[...]


# -----------------------------------------------------------------------------
# Wrapper: embedding gather (glue) + the two pallas_calls.
# -----------------------------------------------------------------------------
def _pick_tile_v(V):
    for t in (1024, 512, 256, 128):
        if V % t == 0:
            return t
    return V


def _vmem_limit_bytes(B, L, H, V, tile_v, wbytes):
    f4 = 4
    resident = (
        3 * B * H * f4                                   # emb, h0, c0
        + B * L * H * f4                                 # encoder_outputs
        + 2 * H * L * wbytes + L * f4                    # w_attn, b_attn
        + 2 * H * H * wbytes + H * f4                    # w_comb, b_comb
        + 8 * H * H * wbytes + 4 * H * f4                # w_ih, w_hh, b_lstm
        + 2 * B * H * f4 + B * L * f4 + B * f4           # h_out, c_out, attn, lse
        + B * H * wbytes + 2 * B * f4                    # scratch
    )
    tiled = H * tile_v * wbytes + tile_v * f4 + B * tile_v * f4
    est = 2 * (resident + 2 * tiled)                     # generous double-buffer headroom
    return int(min(64 * 2**20, max(16 * 2**20, est)))


@functools.partial(jax.jit, static_argnames=("tile_v",))
def attn_decoder_forward(params, input_ids, hidden, cell_state, encoder_outputs,
                         *, tile_v=None):
    """Mirrors AttnDecoderRNN.forward (eval mode).

    input_ids:        (B,)        int32 token ids
    hidden:           (1, B, H)   LSTM hidden state
    cell_state:       (1, B, H)   LSTM cell state
    encoder_outputs:  (B, L, H)
    returns (log_probs (B,V), hidden (1,B,H), cell (1,B,H), attn_weights (B,L))
    """
    emb = params["embedding"][input_ids].astype(jnp.float32)   # gather (glue)
    h0 = hidden[0].astype(jnp.float32)
    c0 = cell_state[0].astype(jnp.float32)
    enc = encoder_outputs.astype(jnp.float32)

    B, H = emb.shape
    L = enc.shape[1]
    V = params["w_out"].shape[1]
    if tile_v is None:
        tile_v = _pick_tile_v(V)
    tile_v = min(tile_v, V)
    assert V % tile_v == 0, (V, tile_v)
    nv = V // tile_v

    cdt = params["w_out"].dtype
    wbytes = jnp.dtype(cdt).itemsize
    vmem_limit = _vmem_limit_bytes(B, L, H, V, tile_v, wbytes)

    def full(shape):
        return pl.BlockSpec(shape, lambda j: (0,) * len(shape))

    in_specs = [
        full((B, H)),            # emb
        full((B, H)),            # h0
        full((B, H)),            # c0
        full((B, L, H)),         # encoder_outputs
        full((2 * H, L)),        # w_attn
        full((1, L)),            # b_attn
        full((2 * H, H)),        # w_comb
        full((1, H)),            # b_comb
        full((4, H, H)),         # w_ih
        full((4, H, H)),         # w_hh
        full((4, 1, H)),         # b_lstm
        pl.BlockSpec((H, tile_v), lambda j: (0, j)),    # w_out (V-tiled)
        pl.BlockSpec((1, tile_v), lambda j: (0, j)),    # b_out (V-tiled)
    ]
    out_specs = (
        pl.BlockSpec((B, tile_v), lambda j: (0, j)),    # raw logits (V-tiled)
        full((B, 1)),                                   # lse
        full((B, H)),                                   # h_out
        full((B, H)),                                   # c_out
        full((B, L)),                                   # attn weights
    )
    out_shapes = (
        jax.ShapeDtypeStruct((B, V), jnp.float32),
        jax.ShapeDtypeStruct((B, 1), jnp.float32),
        jax.ShapeDtypeStruct((B, H), jnp.float32),
        jax.ShapeDtypeStruct((B, H), jnp.float32),
        jax.ShapeDtypeStruct((B, L), jnp.float32),
    )

    logits, lse, h_new, c_new, attn_w = pl.pallas_call(
        _decoder_step_kernel,
        grid=(nv,),
        in_specs=in_specs,
        out_specs=out_specs,
        out_shape=out_shapes,
        scratch_shapes=[
            pltpu.VMEM((B, H), cdt),          # h_sc
            pltpu.VMEM((B, 1), jnp.float32),  # m_sc
            pltpu.VMEM((B, 1), jnp.float32),  # s_sc
        ],
        compiler_params=pltpu.CompilerParams(
            dimension_semantics=("arbitrary",),
            vmem_limit_bytes=vmem_limit,
        ),
    )(
        emb, h0, c0, enc,
        params["w_attn"], params["b_attn"],
        params["w_comb"], params["b_comb"],
        params["w_ih"], params["w_hh"], params["b_lstm"],
        params["w_out"], params["b_out"],
    )

    logp = pl.pallas_call(
        _log_softmax_norm_kernel,
        grid=(nv,),
        in_specs=[
            pl.BlockSpec((B, tile_v), lambda j: (0, j)),
            pl.BlockSpec((B, 1), lambda j: (0, 0)),
        ],
        out_specs=pl.BlockSpec((B, tile_v), lambda j: (0, j)),
        out_shape=jax.ShapeDtypeStruct((B, V), jnp.float32),
        compiler_params=pltpu.CompilerParams(
            dimension_semantics=("parallel",),
        ),
    )(logits, lse)

    return logp, h_new[None], c_new[None], attn_w


# -----------------------------------------------------------------------------
# Pure-JAX f32 reference (module semantics) for correctness checking.
# -----------------------------------------------------------------------------
def attn_decoder_reference(params, input_ids, hidden, cell_state, encoder_outputs):
    f32 = jnp.float32
    emb = params["embedding"][input_ids].astype(f32)
    h, c = hidden[0].astype(f32), cell_state[0].astype(f32)
    w_attn = params["w_attn"].astype(f32)
    w_comb = params["w_comb"].astype(f32)
    w_ih = params["w_ih"].astype(f32)
    w_hh = params["w_hh"].astype(f32)
    w_out = params["w_out"].astype(f32)

    attn_logits = jnp.concatenate([emb, h], 1) @ w_attn + params["b_attn"]
    attn_w = jax.nn.softmax(attn_logits, axis=1)
    attn_applied = jnp.einsum("bl,blh->bh", attn_w, encoder_outputs.astype(f32))
    comb = jnp.concatenate([emb, attn_applied], 1) @ w_comb + params["b_comb"]
    x = jax.nn.relu(comb)
    gates = [x @ w_ih[k] + h @ w_hh[k] + params["b_lstm"][k] for k in range(4)]
    i_g = jax.nn.sigmoid(gates[0])
    f_g = jax.nn.sigmoid(gates[1])
    g_g = jnp.tanh(gates[2])
    o_g = jax.nn.sigmoid(gates[3])
    c_new = f_g * c + i_g * g_g
    h_new = o_g * jnp.tanh(c_new)
    logits = h_new @ w_out + params["b_out"]
    logp = jax.nn.log_softmax(logits, axis=1)
    return logp, h_new[None], c_new[None], attn_w


# -----------------------------------------------------------------------------
# Deterministic parameter construction (shapes from AttnDecoderRNN.__init__).
# -----------------------------------------------------------------------------
def init_params(key, hidden_size, output_size, max_length, weight_dtype=jnp.bfloat16):
    H, V, L = hidden_size, output_size, max_length
    ks = jax.random.split(key, 12)

    def u(k, shape, fan_in):
        bound = 1.0 / jnp.sqrt(fan_in)
        return jax.random.uniform(k, shape, jnp.float32, -bound, bound)

    return {
        # nn.Embedding(V, H): N(0, 1)
        "embedding": jax.random.normal(ks[0], (V, H), jnp.float32),
        # nn.Linear weights stored pre-transposed as (in, out) == torch weight.T;
        # matmul weights in bf16 (MXU compute dtype), biases kept f32.
        "w_attn": u(ks[1], (2 * H, L), 2 * H).astype(weight_dtype),
        "b_attn": u(ks[2], (1, L), 2 * H),
        "w_comb": u(ks[3], (2 * H, H), 2 * H).astype(weight_dtype),
        "b_comb": u(ks[4], (1, H), 2 * H),
        # LSTM weights as per-gate (4, H, H) blocks, gate order (i, f, g, o).
        "w_ih":   u(ks[5], (4, H, H), H).astype(weight_dtype),
        "w_hh":   u(ks[6], (4, H, H), H).astype(weight_dtype),
        "b_lstm": u(ks[7], (4, 1, H), H) + u(ks[8], (4, 1, H), H),   # b_ih + b_hh
        "w_out":  u(ks[9], (H, V), H).astype(weight_dtype),
        "b_out":  u(ks[10], (1, V), H),
    }


if __name__ == "__main__":
    # Small but tile-aligned shapes: B multiple of 8 sublanes, H / L / V
    # multiples of 128 lanes; tile_v=128 gives a 2-step V grid to exercise the
    # tiled output projection + online logsumexp.
    B, H, V, L = 8, 128, 256, 128   # batch, hidden_size, output_size, max_length

    key = jax.random.PRNGKey(0)
    k_par, k_in, k_h, k_c, k_enc = jax.random.split(key, 5)

    params = init_params(k_par, H, V, L)
    input_ids = jax.random.randint(k_in, (B,), 0, V, dtype=jnp.int32)
    hidden = jax.random.normal(k_h, (1, B, H), jnp.float32)
    cell_state = jax.random.normal(k_c, (1, B, H), jnp.float32)
    encoder_outputs = jax.random.normal(k_enc, (B, L, H), jnp.float32)

    outs = attn_decoder_forward(params, input_ids, hidden, cell_state,
                                encoder_outputs, tile_v=128)
    outs = jax.block_until_ready(outs)

    refs = attn_decoder_reference(params, input_ids, hidden, cell_state,
                                  encoder_outputs)
    # bf16 matmul operands + approx reciprocal in the attention softmax =>
    # loosened tolerance vs. the pure-f32 reference.
    for name, o, r in zip(("logp", "hidden", "cell", "attn_w"), outs, refs):
        assert o.shape == r.shape, (name, o.shape, r.shape)
        o32 = o.astype(jnp.float32)
        err = float(jnp.max(jnp.abs(o32 - r)))
        assert jnp.allclose(o32, r, atol=5e-2, rtol=5e-2), (name, err)

    print("KERNEL_OK")
</pallas_src>

<mosaic_0001>
module attributes {stable_mosaic.version = 11 : i64} {
  func.func @_decoder_step_kernel(%arg0: i32, %arg1: memref<8x128xf32, #tpu.memory_space<vmem>>, %arg2: memref<8x128xf32, #tpu.memory_space<vmem>>, %arg3: memref<8x128xf32, #tpu.memory_space<vmem>>, %arg4: memref<8x128x128xf32, #tpu.memory_space<vmem>>, %arg5: memref<256x128xbf16, #tpu.memory_space<vmem>>, %arg6: memref<1x128xf32, #tpu.memory_space<vmem>>, %arg7: memref<256x128xbf16, #tpu.memory_space<vmem>>, %arg8: memref<1x128xf32, #tpu.memory_space<vmem>>, %arg9: memref<4x128x128xbf16, #tpu.memory_space<vmem>>, %arg10: memref<4x128x128xbf16, #tpu.memory_space<vmem>>, %arg11: memref<4x1x128xf32, #tpu.memory_space<vmem>>, %arg12: memref<128x128xbf16, #tpu.memory_space<vmem>>, %arg13: memref<1x128xf32, #tpu.memory_space<vmem>>, %arg14: memref<8x128xf32, #tpu.memory_space<vmem>>, %arg15: memref<8x1xf32, #tpu.memory_space<vmem>>, %arg16: memref<8x128xf32, #tpu.memory_space<vmem>>, %arg17: memref<8x128xf32, #tpu.memory_space<vmem>>, %arg18: memref<8x128xf32, #tpu.memory_space<vmem>>, %arg19: memref<8x128xbf16, #tpu.memory_space<vmem>>, %arg20: memref<8x1xf32, #tpu.memory_space<vmem>>, %arg21: memref<8x1xf32, #tpu.memory_space<vmem>>) attributes {dimension_semantics = [#tpu.dimension_semantics<arbitrary>], iteration_bounds = array<i64: 2>, scalar_prefetch = 0 : i64, scratch_operands = 3 : i64, tpu.core_type = #tpu.core_type<tc>, window_params = [{pipeline_mode = #tpu.pipeline_mode<synchronous>, transform_indices = @transform_0, window_bounds = array<i64: 8, 128>}, {pipeline_mode = #tpu.pipeline_mode<synchronous>, transform_indices = @transform_1, window_bounds = array<i64: 8, 128>}, {pipeline_mode = #tpu.pipeline_mode<synchronous>, transform_indices = @transform_2, window_bounds = array<i64: 8, 128>}, {pipeline_mode = #tpu.pipeline_mode<synchronous>, transform_indices = @transform_3, window_bounds = array<i64: 8, 128, 128>}, {pipeline_mode = #tpu.pipeline_mode<synchronous>, transform_indices = @transform_4, window_bounds = array<i64: 256, 128>}, {pipeline_mode = #tpu.pipeline_mode<synchronous>, transform_indices = @transform_5, window_bounds = array<i64: 1, 128>}, {pipeline_mode = #tpu.pipeline_mode<synchronous>, transform_indices = @transform_6, window_bounds = array<i64: 256, 128>}, {pipeline_mode = #tpu.pipeline_mode<synchronous>, transform_indices = @transform_7, window_bounds = array<i64: 1, 128>}, {pipeline_mode = #tpu.pipeline_mode<synchronous>, transform_indices = @transform_8, window_bounds = array<i64: 4, 128, 128>}, {pipeline_mode = #tpu.pipeline_mode<synchronous>, transform_indices = @transform_9, window_bounds = array<i64: 4, 128, 128>}, {pipeline_mode = #tpu.pipeline_mode<synchronous>, transform_indices = @transform_10, window_bounds = array<i64: 4, 1, 128>}, {transform_indices = @transform_11, window_bounds = array<i64: 128, 128>}, {transform_indices = @transform_12, window_bounds = array<i64: 1, 128>}, {transform_indices = @transform_13, window_bounds = array<i64: 8, 128>}, {pipeline_mode = #tpu.pipeline_mode<synchronous>, transform_indices = @transform_14, window_bounds = array<i64: 8, 1>}, {pipeline_mode = #tpu.pipeline_mode<synchronous>, transform_indices = @transform_15, window_bounds = array<i64: 8, 128>}, {pipeline_mode = #tpu.pipeline_mode<synchronous>, transform_indices = @transform_16, window_bounds = array<i64: 8, 128>}, {pipeline_mode = #tpu.pipeline_mode<synchronous>, transform_indices = @transform_17, window_bounds = array<i64: 8, 128>}]} {
    %c0_i32 = arith.constant 0 : i32
    %0 = arith.cmpi eq, %arg0, %c0_i32 : i32
    %1 = arith.extui %0 : i1 to i32
    %c0_i32_0 = arith.constant 0 : i32
    %2 = arith.cmpi ne, %1, %c0_i32_0 : i32
    scf.if %2 {
      %c0_19 = arith.constant 0 : index
      %c0_20 = arith.constant 0 : index
      %29 = vector.load %arg1[%c0_19, %c0_20] : memref<8x128xf32, #tpu.memory_space<vmem>>, vector<8x128xf32>
      %c0_21 = arith.constant 0 : index
      %c0_22 = arith.constant 0 : index
      %30 = vector.load %arg2[%c0_21, %c0_22] : memref<8x128xf32, #tpu.memory_space<vmem>>, vector<8x128xf32>
      %c0_23 = arith.constant 0 : index
      %c0_24 = arith.constant 0 : index
      %31 = vector.load %arg3[%c0_23, %c0_24] : memref<8x128xf32, #tpu.memory_space<vmem>>, vector<8x128xf32>
      %32 = arith.truncf %29 : vector<8x128xf32> to vector<8x128xbf16>
      %33 = arith.truncf %30 : vector<8x128xf32> to vector<8x128xbf16>
      %c0_25 = arith.constant 0 : index
      %c0_26 = arith.constant 0 : index
      %34 = vector.load %arg5[%c0_25, %c0_26] : memref<256x128xbf16, #tpu.memory_space<vmem>>, vector<128x128xbf16>
      %cst_27 = arith.constant dense<0.000000e+00> : vector<8x128xf32>
      %35 = tpu.matmul %32, %34, %cst_27 {dimension_numbers = #tpu.dot_dimension_numbers<[1], [0], [0], [1], [0, 0, 1, 1], [], []>} : vector<8x128xbf16>, vector<128x128xbf16>, vector<8x128xf32> -> vector<8x128xf32>
      %c128 = arith.constant 128 : index
      %c0_28 = arith.constant 0 : index
      %36 = vector.load %arg5[%c128, %c0_28] : memref<256x128xbf16, #tpu.memory_space<vmem>>, vector<128x128xbf16>
      %cst_29 = arith.constant dense<0.000000e+00> : vector<8x128xf32>
      %37 = tpu.matmul %33, %36, %cst_29 {dimension_numbers = #tpu.dot_dimension_numbers<[1], [0], [0], [1], [0, 0, 1, 1], [], []>} : vector<8x128xbf16>, vector<128x128xbf16>, vector<8x128xf32> -> vector<8x128xf32>
      %38 = arith.addf %35, %37 : vector<8x128xf32>
      %c0_30 = arith.constant 0 : index
      %c0_31 = arith.constant 0 : index
      %39 = vector.load %arg6[%c0_30, %c0_31] : memref<1x128xf32, #tpu.memory_space<vmem>>, vector<1x128xf32>
      %40 = vector.broadcast %39 : vector<1x128xf32> to vector<8x128xf32>
      %41 = arith.addf %38, %40 : vector<8x128xf32>
      %cst_32 = arith.constant dense<0xFF800000> : vector<8xf32>
      %42 = vector.multi_reduction <maximumf>, %41, %cst_32 [1] : vector<8x128xf32> to vector<8xf32>
      %43 = vector.shape_cast %42 : vector<8xf32> to vector<8x1xf32>
      %44 = vector.broadcast %43 : vector<8x1xf32> to vector<8x128xf32>
      %45 = arith.subf %41, %44 : vector<8x128xf32>
      %46 = math.exp %45 : vector<8x128xf32>
      %cst_33 = arith.constant dense<0.000000e+00> : vector<8xf32>
      %47 = vector.multi_reduction <add>, %46, %cst_33 [1] : vector<8x128xf32> to vector<8xf32>
      %48 = vector.shape_cast %47 : vector<8xf32> to vector<8x1xf32>
      %49 = tpu.reciprocal %48 {approx = true} : vector<8x1xf32> -> vector<8x1xf32>
      %50 = vector.broadcast %49 : vector<8x1xf32> to vector<8x128xf32>
      %51 = arith.mulf %46, %50 : vector<8x128xf32>
      %c0_34 = arith.constant 0 : index
      %c0_35 = arith.constant 0 : index
      %52 = vector.load %arg18[%c0_34, %c0_35] : memref<8x128xf32, #tpu.memory_space<vmem>>, vector<8x128xf32>
      tpu.vector_store %arg18[%c0_34, %c0_35], %51 {strides = array<i32>} : memref<8x128xf32, #tpu.memory_space<vmem>>, vector<8x128xf32>,
      %53 = vector.shape_cast %51 : vector<8x128xf32> to vector<8x1x128xf32>
      %54 = arith.truncf %53 : vector<8x1x128xf32> to vector<8x1x128xbf16>
      %c0_36 = arith.constant 0 : index
      %c0_37 = arith.constant 0 : index
      %c0_38 = arith.constant 0 : index
      %55 = vector.load %arg4[%c0_36, %c0_37, %c0_38] : memref<8x128x128xf32, #tpu.memory_space<vmem>>, vector<8x128x128xf32>
      %56 = arith.truncf %55 : vector<8x128x128xf32> to vector<8x128x128xbf16>
      "tpu.trace_start"() <{level = 10 : i32, message = "bql,blh->bqh"}> : () -> ()
      %cst_39 = arith.constant dense<0.000000e+00> : vector<8x1x128xf32>
      %57 = tpu.matmul %54, %56, %cst_39 {dimension_numbers = #tpu.dot_dimension_numbers<[2], [1], [1], [2], [0, 0, 0, 1, 1, 2], [0], [0]>} : vector<8x1x128xbf16>, vector<8x128x128xbf16>, vector<8x1x128xf32> -> vector<8x1x128xf32>
      "tpu.trace_stop"() : () -> ()
      %58 = vector.shape_cast %57 : vector<8x1x128xf32> to vector<8x128xf32>
      %c0_40 = arith.constant 0 : index
      %c0_41 = arith.constant 0 : index
      %59 = vector.load %arg7[%c0_40, %c0_41] : memref<256x128xbf16, #tpu.memory_space<vmem>>, vector<128x128xbf16>
      %cst_42 = arith.constant dense<0.000000e+00> : vector<8x128xf32>
      %60 = tpu.matmul %32, %59, %cst_42 {dimension_numbers = #tpu.dot_dimension_numbers<[1], [0], [0], [1], [0, 0, 1, 1], [], []>} : vector<8x128xbf16>, vector<128x128xbf16>, vector<8x128xf32> -> vector<8x128xf32>
      %61 = arith.truncf %58 : vector<8x128xf32> to vector<8x128xbf16>
      %c128_43 = arith.constant 128 : index
      %c0_44 = arith.constant 0 : index
      %62 = vector.load %arg7[%c128_43, %c0_44] : memref<256x128xbf16, #tpu.memory_space<vmem>>, vector<128x128xbf16>
      %cst_45 = arith.constant dense<0.000000e+00> : vector<8x128xf32>
      %63 = tpu.matmul %61, %62, %cst_45 {dimension_numbers = #tpu.dot_dimension_numbers<[1], [0], [0], [1], [0, 0, 1, 1], [], []>} : vector<8x128xbf16>, vector<128x128xbf16>, vector<8x128xf32> -> vector<8x128xf32>
      %64 = arith.addf %60, %63 : vector<8x128xf32>
      %c0_46 = arith.constant 0 : index
      %c0_47 = arith.constant 0 : index
      %65 = vector.load %arg8[%c0_46, %c0_47] : memref<1x128xf32, #tpu.memory_space<vmem>>, vector<1x128xf32>
      %66 = vector.broadcast %65 : vector<1x128xf32> to vector<8x128xf32>
      %67 = arith.addf %64, %66 : vector<8x128xf32>
      %cst_48 = arith.constant 0.000000e+00 : f32
      %68 = vector.broadcast %cst_48 : f32 to vector<8x128xf32>
      %69 = arith.maximumf %67, %68 : vector<8x128xf32>
      %70 = arith.truncf %69 : vector<8x128xf32> to vector<8x128xbf16>
      %c0_49 = arith.constant 0 : index
      %c0_50 = arith.constant 0 : index
      %c0_51 = arith.constant 0 : index
      %71 = vector.load %arg9[%c0_49, %c0_50, %c0_51] : memref<4x128x128xbf16, #tpu.memory_space<vmem>>, vector<1x128x128xbf16>
      %72 = vector.shape_cast %71 : vector<1x128x128xbf16> to vector<128x128xbf16>
      %cst_52 = arith.constant dense<0.000000e+00> : vector<8x128xf32>
      %73 = tpu.matmul %70, %72, %cst_52 {dimension_numbers = #tpu.dot_dimension_numbers<[1], [0], [0], [1], [0, 0, 1, 1], [], []>} : vector<8x128xbf16>, vector<128x128xbf16>, vector<8x128xf32> -> vector<8x128xf32>
      %c0_53 = arith.constant 0 : index
      %c0_54 = arith.constant 0 : index
      %c0_55 = arith.constant 0 : index
      %74 = vector.load %arg10[%c0_53, %c0_54, %c0_55] : memref<4x128x128xbf16, #tpu.memory_space<vmem>>, vector<1x128x128xbf16>
      %75 = vector.shape_cast %74 : vector<1x128x128xbf16> to vector<128x128xbf16>
      %cst_56 = arith.constant dense<0.000000e+00> : vector<8x128xf32>
      %76 = tpu.matmul %33, %75, %cst_56 {dimension_numbers = #tpu.dot_dimension_numbers<[1], [0], [0], [1], [0, 0, 1, 1], [], []>} : vector<8x128xbf16>, vector<128x128xbf16>, vector<8x128xf32> -> vector<8x128xf32>
      %77 = arith.addf %73, %76 : vector<8x128xf32>
      %c0_57 = arith.constant 0 : index
      %c0_58 = arith.constant 0 : index
      %c0_59 = arith.constant 0 : index
      %78 = vector.load %arg11[%c0_57, %c0_58, %c0_59] : memref<4x1x128xf32, #tpu.memory_space<vmem>>, vector<1x1x128xf32>
      %79 = vector.shape_cast %78 : vector<1x1x128xf32> to vector<1x128xf32>
      %80 = vector.broadcast %79 : vector<1x128xf32> to vector<8x128xf32>
      %81 = arith.addf %77, %80 : vector<8x128xf32>
      %82 = arith.negf %81 : vector<8x128xf32>
      %83 = math.exp %82 : vector<8x128xf32>
      %cst_60 = arith.constant 1.000000e+00 : f32
      %84 = vector.broadcast %cst_60 : f32 to vector<8x128xf32>
      %85 = arith.addf %84, %83 : vector<8x128xf32>
      %86 = arith.divf %84, %85 : vector<8x128xf32>
      %c1 = arith.constant 1 : index
      %c0_61 = arith.constant 0 : index
      %c0_62 = arith.constant 0 : index
      %87 = vector.load %arg9[%c1, %c0_61, %c0_62] : memref<4x128x128xbf16, #tpu.memory_space<vmem>>, vector<1x128x128xbf16>
      %88 = vector.shape_cast %87 : vector<1x128x128xbf16> to vector<128x128xbf16>
      %cst_63 = arith.constant dense<0.000000e+00> : vector<8x128xf32>
      %89 = tpu.matmul %70, %88, %cst_63 {dimension_numbers = #tpu.dot_dimension_numbers<[1], [0], [0], [1], [0, 0, 1, 1], [], []>} : vector<8x128xbf16>, vector<128x128xbf16>, vector<8x128xf32> -> vector<8x128xf32>
      %c1_64 = arith.constant 1 : index
      %c0_65 = arith.constant 0 : index
      %c0_66 = arith.constant 0 : index
      %90 = vector.load %arg10[%c1_64, %c0_65, %c0_66] : memref<4x128x128xbf16, #tpu.memory_space<vmem>>, vector<1x128x128xbf16>
      %91 = vector.shape_cast %90 : vector<1x128x128xbf16> to vector<128x128xbf16>
      %cst_67 = arith.constant dense<0.000000e+00> : vector<8x128xf32>
      %92 = tpu.matmul %33, %91, %cst_67 {dimension_numbers = #tpu.dot_dimension_numbers<[1], [0], [0], [1], [0, 0, 1, 1], [], []>} : vector<8x128xbf16>, vector<128x128xbf16>, vector<8x128xf32> -> vector<8x128xf32>
      %93 = arith.addf %89, %92 : vector<8x128xf32>
      %c1_68 = arith.constant 1 : index
      %c0_69 = arith.constant 0 : index
      %c0_70 = arith.constant 0 : index
      %94 = vector.load %arg11[%c1_68, %c0_69, %c0_70] : memref<4x1x128xf32, #tpu.memory_space<vmem>>, vector<1x1x128xf32>
      %95 = vector.shape_cast %94 : vector<1x1x128xf32> to vector<1x128xf32>
      %96 = vector.broadcast %95 : vector<1x128xf32> to vector<8x128xf32>
      %97 = arith.addf %93, %96 : vector<8x128xf32>
      %98 = arith.negf %97 : vector<8x128xf32>
      %99 = math.exp %98 : vector<8x128xf32>
      %cst_71 = arith.constant 1.000000e+00 : f32
      %100 = vector.broadcast %cst_71 : f32 to vector<8x128xf32>
      %101 = arith.addf %100, %99 : vector<8x128xf32>
      %102 = arith.divf %100, %101 : vector<8x128xf32>
      %c2 = arith.constant 2 : index
      %c0_72 = arith.constant 0 : index
      %c0_73 = arith.constant 0 : index
      %103 = vector.load %arg9[%c2, %c0_72, %c0_73] : memref<4x128x128xbf16, #tpu.memory_space<vmem>>, vector<1x128x128xbf16>
      %104 = vector.shape_cast %103 : vector<1x128x128xbf16> to vector<128x128xbf16>
      %cst_74 = arith.constant dense<0.000000e+00> : vector<8x128xf32>
      %105 = tpu.matmul %70, %104, %cst_74 {dimension_numbers = #tpu.dot_dimension_numbers<[1], [0], [0], [1], [0, 0, 1, 1], [], []>} : vector<8x128xbf16>, vector<128x128xbf16>, vector<8x128xf32> -> vector<8x128xf32>
      %c2_75 = arith.constant 2 : index
      %c0_76 = arith.constant 0 : index
      %c0_77 = arith.constant 0 : index
      %106 = vector.load %arg10[%c2_75, %c0_76, %c0_77] : memref<4x128x128xbf16, #tpu.memory_space<vmem>>, vector<1x128x128xbf16>
      %107 = vector.shape_cast %106 : vector<1x128x128xbf16> to vector<128x128xbf16>
      %cst_78 = arith.constant dense<0.000000e+00> : vector<8x128xf32>
      %108 = tpu.matmul %33, %107, %cst_78 {dimension_numbers = #tpu.dot_dimension_numbers<[1], [0], [0], [1], [0, 0, 1, 1], [], []>} : vector<8x128xbf16>, vector<128x128xbf16>, vector<8x128xf32> -> vector<8x128xf32>
      %109 = arith.addf %105, %108 : vector<8x128xf32>
      %c2_79 = arith.constant 2 : index
      %c0_80 = arith.constant 0 : index
      %c0_81 = arith.constant 0 : index
      %110 = vector.load %arg11[%c2_79, %c0_80, %c0_81] : memref<4x1x128xf32, #tpu.memory_space<vmem>>, vector<1x1x128xf32>
      %111 = vector.shape_cast %110 : vector<1x1x128xf32> to vector<1x128xf32>
      %112 = vector.broadcast %111 : vector<1x128xf32> to vector<8x128xf32>
      %113 = arith.addf %109, %112 : vector<8x128xf32>
      %114 = math.tanh %113 : vector<8x128xf32>
      %c3 = arith.constant 3 : index
      %c0_82 = arith.constant 0 : index
      %c0_83 = arith.constant 0 : index
      %115 = vector.load %arg9[%c3, %c0_82, %c0_83] : memref<4x128x128xbf16, #tpu.memory_space<vmem>>, vector<1x128x128xbf16>
      %116 = vector.shape_cast %115 : vector<1x128x128xbf16> to vector<128x128xbf16>
      %cst_84 = arith.constant dense<0.000000e+00> : vector<8x128xf32>
      %117 = tpu.matmul %70, %116, %cst_84 {dimension_numbers = #tpu.dot_dimension_numbers<[1], [0], [0], [1], [0, 0, 1, 1], [], []>} : vector<8x128xbf16>, vector<128x128xbf16>, vector<8x128xf32> -> vector<8x128xf32>
      %c3_85 = arith.constant 3 : index
      %c0_86 = arith.constant 0 : index
      %c0_87 = arith.constant 0 : index
      %118 = vector.load %arg10[%c3_85, %c0_86, %c0_87] : memref<4x128x128xbf16, #tpu.memory_space<vmem>>, vector<1x128x128xbf16>
      %119 = vector.shape_cast %118 : vector<1x128x128xbf16> to vector<128x128xbf16>
      %cst_88 = arith.constant dense<0.000000e+00> : vector<8x128xf32>
      %120 = tpu.matmul %33, %119, %cst_88 {dimension_numbers = #tpu.dot_dimension_numbers<[1], [0], [0], [1], [0, 0, 1, 1], [], []>} : vector<8x128xbf16>, vector<128x128xbf16>, vector<8x128xf32> -> vector<8x128xf32>
      %121 = arith.addf %117, %120 : vector<8x128xf32>
      %c3_89 = arith.constant 3 : index
      %c0_90 = arith.constant 0 : index
      %c0_91 = arith.constant 0 : index
      %122 = vector.load %arg11[%c3_89, %c0_90, %c0_91] : memref<4x1x128xf32, #tpu.memory_space<vmem>>, vector<1x1x128xf32>
      %123 = vector.shape_cast %122 : vector<1x1x128xf32> to vector<1x128xf32>
      %124 = vector.broadcast %123 : vector<1x128xf32> to vector<8x128xf32>
      %125 = arith.addf %121, %124 : vector<8x128xf32>
      %126 = arith.negf %125 : vector<8x128xf32>
      %127 = math.exp %126 : vector<8x128xf32>
      %cst_92 = arith.constant 1.000000e+00 : f32
      %128 = vector.broadcast %cst_92 : f32 to vector<8x128xf32>
      %129 = arith.addf %128, %127 : vector<8x128xf32>
      %130 = arith.divf %128, %129 : vector<8x128xf32>
      %131 = arith.mulf %102, %31 : vector<8x128xf32>
      %132 = arith.mulf %86, %114 : vector<8x128xf32>
      %133 = arith.addf %131, %132 : vector<8x128xf32>
      %134 = math.tanh %133 : vector<8x128xf32>
      %135 = arith.mulf %130, %134 : vector<8x128xf32>
      %c0_93 = arith.constant 0 : index
      %c0_94 = arith.constant 0 : index
      %136 = vector.load %arg17[%c0_93, %c0_94] : memref<8x128xf32, #tpu.memory_space<vmem>>, vector<8x128xf32>
      tpu.vector_store %arg17[%c0_93, %c0_94], %133 {strides = array<i32>} : memref<8x128xf32, #tpu.memory_space<vmem>>, vector<8x128xf32>,
      %c0_95 = arith.constant 0 : index
      %c0_96 = arith.constant 0 : index
      %137 = vector.load %arg16[%c0_95, %c0_96] : memref<8x128xf32, #tpu.memory_space<vmem>>, vector<8x128xf32>
      tpu.vector_store %arg16[%c0_95, %c0_96], %135 {strides = array<i32>} : memref<8x128xf32, #tpu.memory_space<vmem>>, vector<8x128xf32>,
      %138 = arith.truncf %135 : vector<8x128xf32> to vector<8x128xbf16>
      %c0_97 = arith.constant 0 : index
      %c0_98 = arith.constant 0 : index
      %139 = vector.load %arg19[%c0_97, %c0_98] : memref<8x128xbf16, #tpu.memory_space<vmem>>, vector<8x128xbf16>
      tpu.vector_store %arg19[%c0_97, %c0_98], %138 {strides = array<i32>} : memref<8x128xbf16, #tpu.memory_space<vmem>>, vector<8x128xbf16>,
      %cst_99 = arith.constant 0xFF800000 : f32
      %140 = vector.broadcast %cst_99 : f32 to vector<8x1xf32>
      %c0_100 = arith.constant 0 : index
      %c0_101 = arith.constant 0 : index
      %141 = vector.load %arg20[%c0_100, %c0_101] : memref<8x1xf32, #tpu.memory_space<vmem>>, vector<8x1xf32>
      tpu.vector_store %arg20[%c0_100, %c0_101], %140 {strides = array<i32>} : memref<8x1xf32, #tpu.memory_space<vmem>>, vector<8x1xf32>,
      %cst_102 = arith.constant 0.000000e+00 : f32
      %142 = vector.broadcast %cst_102 : f32 to vector<8x1xf32>
      %c0_103 = arith.constant 0 : index
      %c0_104 = arith.constant 0 : index
      %143 = vector.load %arg21[%c0_103, %c0_104] : memref<8x1xf32, #tpu.memory_space<vmem>>, vector<8x1xf32>
      tpu.vector_store %arg21[%c0_103, %c0_104], %142 {strides = array<i32>} : memref<8x1xf32, #tpu.memory_space<vmem>>, vector<8x1xf32>,
    } else {
    }
    %c0 = arith.constant 0 : index
    %c0_1 = arith.constant 0 : index
    %3 = vector.load %arg19[%c0, %c0_1] : memref<8x128xbf16, #tpu.memory_space<vmem>>, vector<8x128xbf16>
    %c0_2 = arith.constant 0 : index
    %c0_3 = arith.constant 0 : index
    %4 = vector.load %arg12[%c0_2, %c0_3] : memref<128x128xbf16, #tpu.memory_space<vmem>>, vector<128x128xbf16>
    %cst = arith.constant dense<0.000000e+00> : vector<8x128xf32>
    %5 = tpu.matmul %3, %4, %cst {dimension_numbers = #tpu.dot_dimension_numbers<[1], [0], [0], [1], [0, 0, 1, 1], [], []>} : vector<8x128xbf16>, vector<128x128xbf16>, vector<8x128xf32> -> vector<8x128xf32>
    %c0_4 = arith.constant 0 : index
    %c0_5 = arith.constant 0 : index
    %6 = vector.load %arg13[%c0_4, %c0_5] : memref<1x128xf32, #tpu.memory_space<vmem>>, vector<1x128xf32>
    %7 = vector.broadcast %6 : vector<1x128xf32> to vector<8x128xf32>
    %8 = arith.addf %5, %7 : vector<8x128xf32>
    %c0_6 = arith.constant 0 : index
    %c0_7 = arith.constant 0 : index
    %9 = vector.load %arg14[%c0_6, %c0_7] : memref<8x128xf32, #tpu.memory_space<vmem>>, vector<8x128xf32>
    tpu.vector_store %arg14[%c0_6, %c0_7], %8 {strides = array<i32>} : memref<8x128xf32, #tpu.memory_space<vmem>>, vector<8x128xf32>,
    %c0_8 = arith.constant 0 : index
    %c0_9 = arith.constant 0 : index
    %10 = vector.load %arg20[%c0_8, %c0_9] : memref<8x1xf32, #tpu.memory_space<vmem>>, vector<8x1xf32>
    %cst_10 = arith.constant dense<0xFF800000> : vector<8xf32>
    %11 = vector.multi_reduction <maximumf>, %8, %cst_10 [1] : vector<8x128xf32> to vector<8xf32>
    %12 = vector.shape_cast %11 : vector<8xf32> to vector<8x1xf32>
    %13 = arith.maximumf %10, %12 : vector<8x1xf32>
    %c0_11 = arith.constant 0 : index
    %c0_12 = arith.constant 0 : index
    %14 = vector.load %arg21[%c0_11, %c0_12] : memref<8x1xf32, #tpu.memory_space<vmem>>, vector<8x1xf32>
    %15 = arith.subf %10, %13 : vector<8x1xf32>
    %16 = math.exp %15 : vector<8x1xf32>
    %17 = arith.mulf %14, %16 : vector<8x1xf32>
    %18 = vector.broadcast %13 : vector<8x1xf32> to vector<8x128xf32>
    %19 = arith.subf %8, %18 : vector<8x128xf32>
    %20 = math.exp %19 : vector<8x128xf32>
    %cst_13 = arith.constant dense<0.000000e+00> : vector<8xf32>
    %21 = vector.multi_reduction <add>, %20, %cst_13 [1] : vector<8x128xf32> to vector<8xf32>
    %22 = vector.shape_cast %21 : vector<8xf32> to vector<8x1xf32>
    %23 = arith.addf %17, %22 : vector<8x1xf32>
    %c0_14 = arith.constant 0 : index
    %c0_15 = arith.constant 0 : index
    %24 = vector.load %arg21[%c0_14, %c0_15] : memref<8x1xf32, #tpu.memory_space<vmem>>, vector<8x1xf32>
    tpu.vector_store %arg21[%c0_14, %c0_15], %23 {strides = array<i32>} : memref<8x1xf32, #tpu.memory_space<vmem>>, vector<8x1xf32>,
    %c0_16 = arith.constant 0 : index
    %c0_17 = arith.constant 0 : index
    %25 = vector.load %arg20[%c0_16, %c0_17] : memref<8x1xf32, #tpu.memory_space<vmem>>, vector<8x1xf32>
    tpu.vector_store %arg20[%c0_16, %c0_17], %13 {strides = array<i32>} : memref<8x1xf32, #tpu.memory_space<vmem>>, vector<8x1xf32>,
    %c1_i32 = arith.constant 1 : i32
    %26 = arith.cmpi eq, %arg0, %c1_i32 : i32
    %27 = arith.extui %26 : i1 to i32
    %c0_i32_18 = arith.constant 0 : i32
    %28 = arith.cmpi ne, %27, %c0_i32_18 : i32
    scf.if %28 {
      %c0_19 = arith.constant 0 : index
      %c0_20 = arith.constant 0 : index
      %29 = vector.load %arg20[%c0_19, %c0_20] : memref<8x1xf32, #tpu.memory_space<vmem>>, vector<8x1xf32>
      %c0_21 = arith.constant 0 : index
      %c0_22 = arith.constant 0 : index
      %30 = vector.load %arg21[%c0_21, %c0_22] : memref<8x1xf32, #tpu.memory_space<vmem>>, vector<8x1xf32>
      %31 = math.log %30 : vector<8x1xf32>
      %32 = arith.addf %29, %31 : vector<8x1xf32>
      %c0_23 = arith.constant 0 : index
      %c0_24 = arith.constant 0 : index
      %33 = vector.load %arg15[%c0_23, %c0_24] : memref<8x1xf32, #tpu.memory_space<vmem>>, vector<8x1xf32>
      tpu.vector_store %arg15[%c0_23, %c0_24], %32 {strides = array<i32>} : memref<8x1xf32, #tpu.memory_space<vmem>>, vector<8x1xf32>,
    } else {
    }
    return
  }
  func.func @transform_0(%arg0: i32) -> (i32, i32) {
    %c0_i32 = arith.constant 0 : i32
    %c0_i32_0 = arith.constant 0 : i32
    %c0_i32_1 = arith.constant 0 : i32
    return %c0_i32, %c0_i32_0 : i32, i32
  }
  func.func @transform_1(%arg0: i32) -> (i32, i32) {
    %c0_i32 = arith.constant 0 : i32
    %c0_i32_0 = arith.constant 0 : i32
    %c0_i32_1 = arith.constant 0 : i32
    return %c0_i32, %c0_i32_0 : i32, i32
  }
  func.func @transform_2(%arg0: i32) -> (i32, i32) {
    %c0_i32 = arith.constant 0 : i32
    %c0_i32_0 = arith.constant 0 : i32
    %c0_i32_1 = arith.constant 0 : i32
    return %c0_i32, %c0_i32_0 : i32, i32
  }
  func.func @transform_3(%arg0: i32) -> (i32, i32, i32) {
    %c0_i32 = arith.constant 0 : i32
    %c0_i32_0 = arith.constant 0 : i32
    %c0_i32_1 = arith.constant 0 : i32
    %c0_i32_2 = arith.constant 0 : i32
    return %c0_i32, %c0_i32_0, %c0_i32_1 : i32, i32, i32
  }
  func.func @transform_4(%arg0: i32) -> (i32, i32) {
    %c0_i32 = arith.constant 0 : i32
    %c0_i32_0 = arith.constant 0 : i32
    %c0_i32_1 = arith.constant 0 : i32
    return %c0_i32, %c0_i32_0 : i32, i32
  }
  func.func @transform_5(%arg0: i32) -> (i32, i32) {
    %c0_i32 = arith.constant 0 : i32
    %c0_i32_0 = arith.constant 0 : i32
    %c0_i32_1 = arith.constant 0 : i32
    return %c0_i32, %c0_i32_0 : i32, i32
  }
  func.func @transform_6(%arg0: i32) -> (i32, i32) {
    %c0_i32 = arith.constant 0 : i32
    %c0_i32_0 = arith.constant 0 : i32
    %c0_i32_1 = arith.constant 0 : i32
    return %c0_i32, %c0_i32_0 : i32, i32
  }
  func.func @transform_7(%arg0: i32) -> (i32, i32) {
    %c0_i32 = arith.constant 0 : i32
    %c0_i32_0 = arith.constant 0 : i32
    %c0_i32_1 = arith.constant 0 : i32
    return %c0_i32, %c0_i32_0 : i32, i32
  }
  func.func @transform_8(%arg0: i32) -> (i32, i32, i32) {
    %c0_i32 = arith.constant 0 : i32
    %c0_i32_0 = arith.constant 0 : i32
    %c0_i32_1 = arith.constant 0 : i32
    %c0_i32_2 = arith.constant 0 : i32
    return %c0_i32, %c0_i32_0, %c0_i32_1 : i32, i32, i32
  }
  func.func @transform_9(%arg0: i32) -> (i32, i32, i32) {
    %c0_i32 = arith.constant 0 : i32
    %c0_i32_0 = arith.constant 0 : i32
    %c0_i32_1 = arith.constant 0 : i32
    %c0_i32_2 = arith.constant 0 : i32
    return %c0_i32, %c0_i32_0, %c0_i32_1 : i32, i32, i32
  }
  func.func @transform_10(%arg0: i32) -> (i32, i32, i32) {
    %c0_i32 = arith.constant 0 : i32
    %c0_i32_0 = arith.constant 0 : i32
    %c0_i32_1 = arith.constant 0 : i32
    %c0_i32_2 = arith.constant 0 : i32
    return %c0_i32, %c0_i32_0, %c0_i32_1 : i32, i32, i32
  }
  func.func @transform_11(%arg0: i32) -> (i32, i32) {
    %c0_i32 = arith.constant 0 : i32
    %c0_i32_0 = arith.constant 0 : i32
    return %c0_i32, %arg0 : i32, i32
  }
  func.func @transform_12(%arg0: i32) -> (i32, i32) {
    %c0_i32 = arith.constant 0 : i32
    %c0_i32_0 = arith.constant 0 : i32
    return %c0_i32, %arg0 : i32, i32
  }
  func.func @transform_13(%arg0: i32) -> (i32, i32) {
    %c0_i32 = arith.constant 0 : i32
    %c0_i32_0 = arith.constant 0 : i32
    return %c0_i32, %arg0 : i32, i32
  }
  func.func @transform_14(%arg0: i32) -> (i32, i32) {
    %c0_i32 = arith.constant 0 : i32
    %c0_i32_0 = arith.constant 0 : i32
    %c0_i32_1 = arith.constant 0 : i32
    return %c0_i32, %c0_i32_0 : i32, i32
  }
  func.func @transform_15(%arg0: i32) -> (i32, i32) {
    %c0_i32 = arith.constant 0 : i32
    %c0_i32_0 = arith.constant 0 : i32
    %c0_i32_1 = arith.constant 0 : i32
    return %c0_i32, %c0_i32_0 : i32, i32
  }
  func.func @transform_16(%arg0: i32) -> (i32, i32) {
    %c0_i32 = arith.constant 0 : i32
    %c0_i32_0 = arith.constant 0 : i32
    %c0_i32_1 = arith.constant 0 : i32
    return %c0_i32, %c0_i32_0 : i32, i32
  }
  func.func @transform_17(%arg0: i32) -> (i32, i32) {
    %c0_i32 = arith.constant 0 : i32
    %c0_i32_0 = arith.constant 0 : i32
    %c0_i32_1 = arith.constant 0 : i32
    return %c0_i32, %c0_i32_0 : i32, i32
  }
}

module attributes {stable_mosaic.version = 11 : i64} {
  func.func @_log_softmax_norm_kernel(%arg0: i32, %arg1: memref<8x128xf32, #tpu.memory_space<vmem>>, %arg2: memref<8x1xf32, #tpu.memory_space<vmem>>, %arg3: memref<8x128xf32, #tpu.memory_space<vmem>>) attributes {dimension_semantics = [#tpu.dimension_semantics<parallel>], iteration_bounds = array<i64: 2>, scalar_prefetch = 0 : i64, scratch_operands = 0 : i64, tpu.core_type = #tpu.core_type<tc>, window_params = [{transform_indices = @transform_0, window_bounds = array<i64: 8, 128>}, {pipeline_mode = #tpu.pipeline_mode<synchronous>, transform_indices = @transform_1, window_bounds = array<i64: 8, 1>}, {transform_indices = @transform_2, window_bounds = array<i64: 8, 128>}]} {
    %c0 = arith.constant 0 : index
    %c0_0 = arith.constant 0 : index
    %0 = vector.load %arg1[%c0, %c0_0] : memref<8x128xf32, #tpu.memory_space<vmem>>, vector<8x128xf32>
    %c0_1 = arith.constant 0 : index
    %c0_2 = arith.constant 0 : index
    %1 = vector.load %arg2[%c0_1, %c0_2] : memref<8x1xf32, #tpu.memory_space<vmem>>, vector<8x1xf32>
    %2 = vector.broadcast %1 : vector<8x1xf32> to vector<8x128xf32>
    %3 = arith.subf %0, %2 : vector<8x128xf32>
    %c0_3 = arith.constant 0 : index
    %c0_4 = arith.constant 0 : index
    %4 = vector.load %arg3[%c0_3, %c0_4] : memref<8x128xf32, #tpu.memory_space<vmem>>, vector<8x128xf32>
    tpu.vector_store %arg3[%c0_3, %c0_4], %3 {strides = array<i32>} : memref<8x128xf32, #tpu.memory_space<vmem>>, vector<8x128xf32>,
    return
  }
  func.func @transform_0(%arg0: i32) -> (i32, i32) {
    %c0_i32 = arith.constant 0 : i32
    %c0_i32_0 = arith.constant 0 : i32
    return %c0_i32, %arg0 : i32, i32
  }
  func.func @transform_1(%arg0: i32) -> (i32, i32) {
    %c0_i32 = arith.constant 0 : i32
    %c0_i32_0 = arith.constant 0 : i32
    %c0_i32_1 = arith.constant 0 : i32
    return %c0_i32, %c0_i32_0 : i32, i32
  }
  func.func @transform_2(%arg0: i32) -> (i32, i32) {
    %c0_i32 = arith.constant 0 : i32
    %c0_i32_0 = arith.constant 0 : i32
    return %c0_i32, %arg0 : i32, i32
  }
}

</mosaic_0001>

<bundles_post_ra>
// kernel: attn_decoder_forward.3
= control target key start
LH: loop header
LB: loop body
LE: loop exit
PB: predicated region body
PF: predicated region fallthrough
CT: control target
= control target key end

     0   :  { %7 = vsyncpa [#allocation3], 0  ;;  %s442_s0 = inlined_call_operand.vmem [shape: f32[8,256], index: 0, kind: input, shape index: {}]   ;;  %s443_s1 = inlined_call_operand.vmem [shape: f32[8,1], index: 1, kind: input, shape index: {}]   ;;  %s444_s2 = inlined_call_operand.hbm [shape: f32[8,256], index: 2, kind: output, shape index: {}]  }
   0x1   :  { %9 = vsyncpa [#allocation3 + $0x1], 0  ;;  %s354_s9 = smov 0   ;;  %s356_s10 = smov 0  }
   0x2   :  { %s358_s11 = smov 0   ;;  %s360_s12 = smov 0  }
   0x3 LB: > { %s375_s13 = sadd.s32 4294967295, %s336_s12   ;;  %s223_s14 = sadd.s32 4294967294, %s336_s12   ;;  %s336_s12 = sphi %s360_s12, %s450_s12   ;;  %s332_s11 = sphi %s358_s11, %s449_s11   ;;  %s328_s10 = sphi %s356_s10, %s448_s10   ;;  %s324_s9 = sphi %s354_s9, %s447_s9  }
   0x4   : > { %s379_s15 = sadd.s32 1, %s336_s12   ;;  %s69_s16 = sadd.s32 1, %s332_s11 }
   0x5   : > { %s66_s17 = ssub.s32 %s336_s12, %s379_s15  ;;  %p79_p0 = scmp.ne.s32.totalorder %s332_s11, %s328_s10 }
   0x6   : > { %p67_p1 = scmp.eq.s32.totalorder %s66_s17, 0  ;;  %p80_p2 = scmp.eq.s32.totalorder %s375_s13, 1 }
   0x7   : > { %p85_p3 = scmp.ne.s32.totalorder %s328_s10, %s324_s9  ;;  %p86_p4 = scmp.eq.s32.totalorder %s223_s14, 1 }
   0x8   : > { %s390_s18 = scalar_select %p67_p1, %s332_s11, %s69_s16  }
   0x9   : > { %p392_p5 = por %p80_p2, %p79_p0  ;;  %p396_p6 = por %p86_p4, %p85_p3 }
   0xa   : > { %p226_p7 = scmp.ge.s32.totalorder %s336_s12, 1  ;;  %p114_p8 = scmp.lt.s32.totalorder %s336_s12, 3 }
   0xc   : > { %p115_p9 = pnand %p226_p7, %p114_p8 }
   0xd   : > { %p135_p10 = scmp.lt.s32.totalorder (!%p115_p9), %s375_s13, 1  ;;  %s132_s23 = sand.u32 (!%p115_p9), 1, %s328_s10  }
   0xe   : > { %118 = sbr.rel (%p115_p9) target bundleno = 141 (0x8d), region = 28  ;;  %s227_s25 = sshll.u32 (!%p115_p9), %s132_s23, 3 }
   0xf   : > { %s230_s27 = sshll.u32 (!%p115_p9), %s375_s13, 3  ;;  %s134_s6 = scalar_lea.vmem (!%p115_p9), [#allocation2], %s227_s25 }
  0x10   : > { %s159_s5 = scalar_lea.hbm (!%p115_p9), %s444_s2, %s230_s27  ;;  %s161_s7 = sshll.u32 (!%p115_p9), %s134_s6, 4  ;;  %s162_s7 = int_to_ptr.vmem [resolvable:$true] %s161_s7 }
  0x11   : > { %s163_s8 = sshll.u32 (!%p115_p9), %s159_s5, 4  ;;  %s149_s14 = scalar_lea.sflag (!%p115_p9), [#allocation3], %s132_s23  ;;  %s164_s8 = int_to_ptr.hbm [resolvable:$true] %s163_s8 }
  0x12   : > { %s294_s22 = scalar_lea.hbm (!%p115_p9), %s444_s2, 16 }
  0x13   : > { %v140_v0 = vld [vmem:[%s443_s1] sm:$0xff]  ;;  %v338_v1 = vmov 0   ;;  %s136_s24 = scalar_select %p135_p10, %s375_s13, 1 }
  0x14   : > { %273 = vset.pattern.permute.xlu0 %v338_v1  ;;  %s288_s13 = sshra.s32 %s164_s8, 4  ;;  %s289_s13 = int_to_ptr.hbm [resolvable:$true] %s288_s13 }
  0x15   : > { %143 = vperm.xlu0 %273, %v140_v0   ;;  %s228_s26 = sshll.u32 %s136_s24, 3  ;;  %s290_s16 = scalar_lea.hbm %s289_s13, 8 }
  0x16   : > { %s138_s30 = scalar_lea.vmem %s442_s0, %s228_s26  ;;  %p291_p11 = scmp.ne.s32.totalorder %s289_s13, %s290_s16 }
  0x17   : > { %v139_v2 = vld [vmem:[%s138_s30] sm:$0xff]  ;;  %p295_p0 = scmp.lt.s32.totalorder %s289_s13, %s444_s2  ;;  %p296_p1 = scmp.lt.s32.totalorder %s294_s22, %s290_s16 }
  0x18   : > { %p292_p12 = pnand %p291_p11, %p392_p5 }
  0x19   : > { %p297_p2 = por %p296_p1, %p295_p0 }
  0x1a   : > { %p293_p13 = pneg %p292_p12 }
  0x1c   : > { %p298_p3 = pnand %p297_p2, %p293_p13 }
  0x87   : > { %v144_v3 = vpop.permute.xlu0 %143 }
  0x88   : > { %v146_v4 = vsub.f32 %v139_v2, %v144_v3 }
  0x8a   : > { %147 = vst [vmem:[%s134_s6] sm:$0xff] %v146_v4 }
  0x8b   : > { %301 = shalt.err (!%p298_p3)
}
  0x8c   : > { %233 = dma.vmem_to_hbm [thread:$0]  (%p392_p5), %s162_s7, 128, %s164_s8, %s149_s14  }
  0x8d PF: > { %p239_p4 = scmp.ge.s32.totalorder %s336_s12, 2  ;;  %s175_s23 = sand.u32 1, %s324_s9  }
  0x8e   : > { %s176_s26 = scalar_lea.sflag [#allocation3], %s175_s23 }
  0x8f   : > { %p236_p7 = pnand %p239_p4, %p396_p6 }
  0x91   : > { %p237_p8 = pneg %p236_p7 }
  0x93   : > { %319 = dma.done.wait (%p237_p8), %s176_s26, 128  }
  0x94   : > { %321 = vsyncadd (%p237_p8), %s176_s26, 4294967168  ;;  %p12_p9 = scmp.ge.s32.totalorder %s379_s15, 4   ;;  %s447_s9 = smov %s328_s10 }
  0x95   : > { %s448_s10 = smov %s332_s11  ;;  %s449_s11 = smov %s390_s18 }
  0x96   : > { %s450_s12 = smov %s379_s15  ;;  %14 = sbr.rel (!%p12_p9) target bundleno = 3 (0x3), region = 63 }
  0x9b   :  { %182 = vsyncpa [#allocation3], 1 }
  0x9c   :  { %184 = vsyncpa [#allocation3 + $0x1], 1 }

// kernel: attn_decoder_forward.2
= control target key start
LH: loop header
LB: loop body
LE: loop exit
PB: predicated region body
PF: predicated region fallthrough
CT: control target
= control target key end

     0   :  { %s4235_s0 = inlined_call_operand.vmem [shape: f32[8,128], index: 0, kind: input, shape index: {}]   ;;  %s4236_s1 = inlined_call_operand.vmem [shape: f32[8,128], index: 1, kind: input, shape index: {}]   ;;  %s4237_s2 = inlined_call_operand.vmem [shape: f32[8,128], index: 2, kind: input, shape index: {}]   ;;  %s4238_s3 = inlined_call_operand.hbm [shape: f32[8,128,128], index: 3, kind: input, shape index: {}]   ;;  %s4239_s4 = inlined_call_operand.hbm [shape: bf16[256,128], index: 4, kind: input, shape index: {}]   ;;  %s4240_s5 = inlined_call_operand.vmem [shape: f32[1,128], index: 5, kind: input, shape index: {}]   ;;  %s4241_s6 = inlined_call_operand.hbm [shape: bf16[256,128], index: 6, kind: input, shape index: {}]   ;;  %s4242_s7 = inlined_call_operand.vmem [shape: f32[1,128], index: 7, kind: input, shape index: {}]   ;;  %s4243_s8 = inlined_call_operand.hbm [shape: bf16[4,128,128], index: 8, kind: input, shape index: {}]   ;;  %s4244_s9 = inlined_call_operand.hbm [shape: bf16[4,128,128], index: 9, kind: input, shape index: {}]   ;;  %s4245_s10 = inlined_call_operand.vmem [shape: f32[4,1,128], index: 10, kind: input, shape index: {}]   ;;  %s4246_s11 = inlined_call_operand.hbm [shape: bf16[128,256], index: 11, kind: input, shape index: {}]   ;;  %s4247_s12 = inlined_call_operand.vmem [shape: f32[1,256], index: 12, kind: input, shape index: {}]   ;;  %s4248_s13 = inlined_call_operand.vmem [shape: f32[8,256], index: 13, kind: output, shape index: {0}]   ;;  %s4249_s14 = inlined_call_operand.vmem [shape: f32[8,1], index: 14, kind: output, shape index: {1}]   ;;  %s4250_s15 = inlined_call_operand.hbm [shape: f32[8,128], index: 15, kind: output, shape index: {2}]   ;;  %s4251_s16 = inlined_call_operand.hbm [shape: f32[8,128], index: 16, kind: output, shape index: {3}]   ;;  %s4252_s17 = inlined_call_operand.hbm [shape: f32[8,128], index: 17, kind: output, shape index: {4}]  }
   0x1   :  { %4254 = sst [smem:[#allocation26_spill]] %s4235_s0 }
   0x2   :  { %4255 = sst [smem:[#allocation27_spill]] %s4236_s1 }
   0x3   :  { %4256 = sst [smem:[#allocation28_spill]] %s4238_s3 }
   0x4   :  { %4257 = sst [smem:[#allocation29_spill]] %s4239_s4 }
   0x5   :  { %4258 = sst [smem:[#allocation30_spill]] %s4241_s6 }
   0x6   :  { %4259 = sst [smem:[#allocation31_spill]] %s4243_s8 }
   0x7   :  { %4260 = sst [smem:[#allocation32_spill]] %s4244_s9 }
   0x8   :  { %4261 = sst [smem:[#allocation33_spill]] %s4250_s15 }
   0x9   :  { %4262 = sst [smem:[#allocation34_spill]] %s4251_s16 }
   0xa   :  { %4263 = sst [smem:[#allocation35_spill]] %s4252_s17 }
   0xb   :  { %23 = vsyncpa [#allocation6], 0 }
   0xc   :  { %24 = vsyncpa [#allocation9], 0 }
   0xd   :  { %25 = vsyncpa [#allocation12], 0 }
   0xe   :  { %26 = vsyncpa [#allocation15], 0 }
   0xf   :  { %28 = vsyncpa [#allocation15 + $0x1], 0 }
  0x10   :  { %29 = vsyncpa [#allocation7], 0 }
  0x11   :  { %30 = vsyncpa [#allocation18], 0  ;;  %s3974_s24 = smov 0   ;;  %s3976_s25 = smov 0  }
  0x12   :  { %s3978_s26 = smov 0   ;;  %s3980_s27 = smov 0  }
  0x13 LB: > { %s3993_s28 = sadd.s32 4294967295, %s3867_s27   ;;  %p287_p0 = scmp.ne.s32.totalorder %s3859_s25, %s3855_s24  ;;  %s3867_s27 = sphi %s3980_s27, %s4282_s27   ;;  %s3863_s26 = sphi %s3978_s26, %s4281_s26   ;;  %s3859_s25 = sphi %s3976_s25, %s4280_s25   ;;  %s3855_s24 = sphi %s3974_s24, %s4279_s24  }
  0x14   : > { %p288_p1 = scmp.eq.s32.totalorder %s3993_s28, 0  ;;  %p2844_p2 = scmp.ge.s32.totalorder %s3867_s27, 1 }
  0x15   : > { %p434_p3 = scmp.lt.s32.totalorder %s3867_s27, 3  ;;  %p2845_p4 = scmp.ne.s32.totalorder %s3993_s28, 0 }
  0x16   : > { %p4002_p5 = por %p288_p1, %p287_p0  ;;  %s4265_s4 = sld [smem:[#allocation29_spill]] }
  0x17   : > { %p4009_p6 = pnand %p2844_p2, %p434_p3  ;;  %s3869_s1 = smov [#allocation8]  }
  0x18   : > { %s470_s20 = sshll.u32 %s3869_s1, 4  ;;  %s4268_s8 = sld [smem:[#allocation31_spill]]  ;;  %s471_s20 = int_to_ptr.vmem [resolvable:$true] %s470_s20 }
  0x19   : > { %p3431_p7 = pneg %p4009_p6  ;;  %s3870_s0 = smov 64  }
  0x1a   : > { %s3871_s30 = smov 4   ;;  %s3872_s1 = smov [#allocation11]  }
  0x1b   : > { %p4017_p8 = pnand %p3431_p7, %p288_p1  ;;  %s4269_s3 = sld [smem:[#allocation28_spill]] }
  0x1c   : > { %s468_s18 = sshll.u32 %s4265_s4, 4  ;;  %s504_s4 = sshll.u32 %s3872_s1, 4  ;;  %s469_s18 = int_to_ptr.hbm [resolvable:$true] %s468_s18  ;;  %s505_s4 = int_to_ptr.vmem [resolvable:$true] %s504_s4 }
  0x1d   : > { %3437 = dma.hbm_to_vmem [thread:$0]  (!%p4017_p8), %s469_s18, 2048, %s471_s20, [#allocation9], %s3870_s0, %s3870_s0, %s3871_s30  }
  0x1e   : > { %s502_s24 = sshll.u32 %s4268_s8, 4  ;;  %s3873_s22 = smov [#allocation5]   ;;  %s503_s24 = int_to_ptr.hbm [resolvable:$true] %s502_s24 }
  0x1f   : > { %3443 = dma.hbm_to_vmem [thread:$0]  (!%p4017_p8), %s503_s24, 4096, %s505_s4, [#allocation12], %s3870_s0, %s3870_s0, %s3871_s30  }
  0x20   : > { %s456_s23 = sshll.u32 %s3873_s22, 4  ;;  %s4270_s6 = sld [smem:[#allocation30_spill]]  ;;  %s457_s23 = int_to_ptr.vmem [resolvable:$true] %s456_s23 }
  0x21   : > { %s454_s16 = sshll.u32 %s4269_s3, 4  ;;  %s4253_s15 = smov 128   ;;  %s455_s16 = int_to_ptr.hbm [resolvable:$true] %s454_s16 }
  0x22   : > { %s3875_s17 = smov 8   ;;  %s3876_s4 = smov [#allocation10]  }
  0x23   : > { %3434 = dma.hbm_to_vmem [thread:$0]  (!%p4017_p8), %s455_s16, 16384, %s457_s23, [#allocation6], %s4253_s15, %s4253_s15, %s3875_s17  }
  0x24   : > { %s487_s24 = sshll.u32 %s3876_s4, 4  ;;  %s4271_s9 = sld [smem:[#allocation32_spill]]  ;;  %s488_s24 = int_to_ptr.vmem [resolvable:$true] %s487_s24 }
  0x25   : > { %s3877_s16 = smov [#allocation13]   ;;  %s4053_s18 = sadd.s32 1, %s3867_s27  }
  0x26   : > { %s485_s20 = sshll.u32 %s4270_s6, 4  ;;  %s518_s23 = sshll.u32 %s3877_s16, 4  ;;  %s486_s20 = int_to_ptr.hbm [resolvable:$true] %s485_s20  ;;  %s519_s23 = int_to_ptr.vmem [resolvable:$true] %s518_s23 }
  0x27   : > { %3440 = dma.hbm_to_vmem [thread:$0]  (!%p4017_p8), %s486_s20, 2048, %s488_s24, [#allocation9], %s3870_s0, %s3870_s0, %s3871_s30  }
  0x28   : > { %s271_s17 = ssub.s32 %s3867_s27, %s4053_s18  ;;  %s274_s4 = sadd.s32 1, %s3863_s26 }
  0x29   : > { %p272_p9 = scmp.eq.s32.totalorder %s271_s17, 0  ;;  %p281_p10 = scmp.ne.s32.totalorder %s3863_s26, %s3859_s25 }
  0x2a   : > { %s516_s8 = sshll.u32 %s4271_s9, 4  ;;  %p282_p11 = scmp.eq.s32.totalorder %s3867_s27, 0  ;;  %s517_s8 = int_to_ptr.hbm [resolvable:$true] %s516_s8 }
  0x2b   : > { %3446 = dma.hbm_to_vmem [thread:$0]  (!%p4017_p8), %s517_s8, 4096, %s519_s23, [#allocation12], %s3870_s0, %s3870_s0, %s3871_s30  }
  0x2c   : > { %p3456_p12 = scmp.lt.s32.totalorder %s3867_s27, 2  ;;  %p283_p13 = por %p282_p11, %p281_p10 }
  0x2d   : > { %s4068_s1 = scalar_select %p272_p9, %s3863_s26, %s274_s4  }
  0x2e   : > { %s535_s20 = sand.u32 1, %s3863_s26   ;;  %s2852_s22 = sshll.u32 %s3867_s27, 2 }
  0x2f   : > { %s2851_s24 = sshll.u32 %s535_s20, 6  ;;  %s543_s21 = scalar_lea.hbm %s4246_s11, %s2852_s22 }
  0x30   : > { %s539_s3 = scalar_lea.vmem [#allocation14], %s2851_s24  ;;  %s544_s9 = sshll.u32 %s543_s21, 4  ;;  %s545_s9 = int_to_ptr.hbm [resolvable:$true] %s544_s9 }
  0x31   : > { %s546_s6 = sshll.u32 %s539_s3, 4  ;;  %p4075_p0 = pnand %p3456_p12, %p283_p13  ;;  %s547_s6 = int_to_ptr.vmem [resolvable:$true] %s546_s6 }
  0x32   : > { %s536_s23 = scalar_lea.sflag [#allocation15], %s535_s20  ;;  %s3699_s17 = sshra.s32 %s545_s9, 4  ;;  %s3700_s17 = int_to_ptr.hbm [resolvable:$true] %s3699_s17 }
  0x33   : > { %s3701_s4 = scalar_lea.hbm %s3700_s17, 64  ;;  %p3703_p3 = pneg %p4075_p0 }
  0x34   : > { %p3702_p2 = scmp.ne.s32.totalorder %s3700_s17, %s3701_s4  ;;  %s3706_s3 = scalar_lea.hbm %s4246_s11, 128 }
  0x35   : > { %p3707_p9 = scmp.lt.s32.totalorder %s3700_s17, %s4246_s11  ;;  %p3708_p10 = scmp.lt.s32.totalorder %s3706_s3, %s3701_s4 }
  0x36   : > { %p3704_p7 = pnand %p3703_p3, %p3702_p2 }
  0x37   : > { %p3709_p11 = por %p3708_p10, %p3707_p9 }
  0x38   : > { %p3705_p8 = pneg %p3704_p7 }
  0x3a   : > { %p3710_p12 = pnand %p3709_p11, %p3705_p8 }
  0x3c   : > { %3713 = shalt.err (!%p3710_p12)
}
  0x3d   : > { %s4273_s20 = smov 128   ;;  %564 = sbr.rel (%p4009_p6) target bundleno = 1543 (0x607), region = 72 }
  0x3e   : > { %3450 = dma.hbm_to_vmem [thread:$0]  (!%p4075_p0), %s545_s9, 1024, %s547_s6, %s536_s23, %s4273_s20, %s3870_s0, %s3871_s30  }
  0x42   : > { %3830 = dma.done.wait (%p288_p1), [#allocation6], 16384  }
  0x43   : > { %3832 = vsyncadd (%p288_p1), [#allocation6], 4294950912 }
  0x44   : > { %3834 = dma.done.wait (%p288_p1), [#allocation9], 4096  }
  0x45   : > { %3836 = vsyncadd (%p288_p1), [#allocation9], 4294963200 }
  0x46   : > { %3838 = dma.done.wait (%p288_p1), [#allocation12], 8192  }
  0x47   : > { %3840 = vsyncadd (%p288_p1), [#allocation12], 4294959104  ;;  %s591_s6 = sand.u32 1, %s3859_s25  }
  0x48   : > { %s2859_s9 = sshll.u32 %s591_s6, 6  ;;  %s592_s19 = scalar_lea.sflag [#allocation15], %s591_s6 }
  0x49   : > { %s4107_s0 = scalar_lea.vmem [#allocation14], %s2859_s9 }
  0x4a   : > { %3842 = dma.done.wait (%p4002_p5), %s592_s19, 1024  }
  0x4b   : > { %3844 = vsyncadd (%p4002_p5), %s592_s19, 4294966272  ;;  %p649_p6 = scmp.lt.s32.totalorder %s3993_s28, 1  ;;  %s4274_s3 = sld [smem:[#allocation27_spill]] (!%p2845_p4) }
  0x4c   : > { %659 = sbr.rel (%p2845_p4) target bundleno = 984 (0x3d8), region = 100  ;;  %s4275_s20 = sld [smem:[#allocation26_spill]] (!%p2845_p4) }
  0x4d   : > { %s4115_s30 = scalar_select %p649_p6, %s3993_s28, 1 }
  0x4f   : > { %s651_s8 = scalar_lea.vmem %s4247_s12, %s4115_s30  ;;  %s2860_s23 = sshll.u32 %s4115_s30, 3 }
  0x50   : > { %s4125_s27 = scalar_lea.vmem %s4248_s13, %s2860_s23 }
  0x51   : > { %v3308_v0 = vld [vmem:[#allocation8 + $0x78] sm:$0xff]  ;;  %v3307_v2 = vld [vmem:[#allocation8 + $0x70] sm:$0xff]  ;;  %v3306_v4 = vld [vmem:[#allocation8 + $0x68] sm:$0xff]  ;;  %vm1658_vm0 = vcmask 1041409   ;;  %vm1661_vm1 = vcmask 1042434   ;;  %vm1664_vm2 = vcmask 1043459  }
  0x52   : > { %v3300_v1 = vld [vmem:[#allocation8 + $0x38] sm:$0xff]  ;;  %745 = vmatpush.bf16.msra.mxu0 %v3308_v0  ;;  %v3299_v3 = vld [vmem:[#allocation8 + $0x30] sm:$0xff]  ;;  %v3298_v5 = vld [vmem:[#allocation8 + $0x28] sm:$0xff]  ;;  %vm1667_vm3 = vcmask 1044484   ;;  %vm1670_vm4 = vcmask 1045509   ;;  %vm1673_vm5 = vcmask 1046534  }
  0x53   : > { %806 = vmatpush.bf16.msra.mxu1 %v3300_v1  ;;  %v3305_v6 = vld [vmem:[#allocation8 + $0x60] sm:$0xff]  ;;  %v3304_v8 = vld [vmem:[#allocation8 + $0x58] sm:$0xff]  ;;  %v3303_v10 = vld [vmem:[#allocation8 + $0x50] sm:$0xff]  ;;  %vm1676_vm6 = vcmask 1047559   ;;  %vm2521_vm7 = vcmask 7168  }
  0x54   : > { %v3297_v7 = vld [vmem:[#allocation8 + $0x20] sm:$0xff]  ;;  %v3296_v9 = vld [vmem:[#allocation8 + $0x18] sm:$0xff]  ;;  %v3295_v11 = vld [vmem:[#allocation8 + $0x10] sm:$0xff] }
  0x55   : > { %v3302_v12 = vld [vmem:[#allocation8 + $0x48] sm:$0xff]  ;;  %v3301_v14 = vld [vmem:[#allocation8 + $0x40] sm:$0xff]  ;;  %v871_v27 = vld [vmem:[#allocation5 + $0x70] sm:$0xff] }
  0x56   : > { %746 = vmatpush.bf16.msra.mxu0 %v3307_v2  ;;  %v3294_v13 = vld [vmem:[#allocation8 + $0x8] sm:$0xff]  ;;  %v3293_v15 = vld [vmem:[#allocation8] sm:$0xff]  ;;  %v872_v28 = vld [vmem:[#allocation5 + $0x78] sm:$0xff]  ;;  %v999_v30 = vpack.c.bf16 %v871_v27, %v871_v27 }
  0x57   : > { %807 = vmatpush.bf16.msra.mxu1 %v3299_v3  ;;  %v661_v16 = vld [vmem:[%s4274_s3] sm:$0xff]  ;;  %v1000_v31 = vpack.c.bf16 %v872_v28, %v872_v28  ;;  %v888_v32 = vld [vmem:[#allocation5 + $0xf8] sm:$0xff]  ;;  %v869_v41 = vld [vmem:[#allocation5 + $0x60] sm:$0xff] }
  0x58   : > { %v660_v17 = vld [vmem:[%s4275_s20] sm:$0xff]  ;;  %v4135_v18 = vpack.c.bf16 %v661_v16, %v661_v16  ;;  %v904_v35 = vld [vmem:[#allocation5 + $0x178] sm:$0xff]  ;;  %v1016_v36 = vpack.c.bf16 %v888_v32, %v888_v32  ;;  %v1143_v42 = vunpack.c.l.b16 %v999_v30  ;;  %v885_v47 = vld [vmem:[#allocation5 + $0xe0] sm:$0xff]  ;;  %v997_v56 = vpack.c.bf16 %v869_v41, %v869_v41 }
  0x59   : > { %v4137_v19 = vpack.c.bf16 %v660_v17, %v660_v17  ;;  %v3515_v20 = vld [vmem:[%s4240_s5] ss:$0 sm:$0xff]  ;;  %v887_v29 = vld [vmem:[#allocation5 + $0xf0] sm:$0xff]  ;;  %v1032_v38 = vpack.c.bf16 %v904_v35, %v904_v35  ;;  %v920_v40 = vld [vmem:[#allocation5 + $0x1f8] sm:$0xff]  ;;  %v1144_v43 = vunpack.c.l.b16 %v1000_v31  ;;  %v1013_v63 = vpack.c.bf16 %v885_v47, %v885_v47 }
  0x5a   : > { %747 = vmatpush.bf16.msra.mxu0 %v3306_v4  ;;  %v1015_v33 = vpack.c.bf16 %v887_v29, %v887_v29  ;;  %v903_v34 = vld [vmem:[#allocation5 + $0x170] sm:$0xff]  ;;  %v870_v46 = vld [vmem:[#allocation5 + $0x68] sm:$0xff]  ;;  %v1205_v48 = vunpack.c.l.b16 %v1016_v36  ;;  %v1048_v51 = vpack.c.bf16 %v920_v40, %v920_v40  ;;  %v901_v53 = vld [vmem:[#allocation5 + $0x160] sm:$0xff]  ;;  %v1141_v1 = vunpack.c.l.b16 %v997_v56 }
  0x5b   : > { %808 = vmatpush.bf16.msra.mxu1 %v3298_v5  ;;  %v1031_v37 = vpack.c.bf16 %v903_v34, %v903_v34  ;;  %v919_v39 = vld [vmem:[#allocation5 + $0x1f0] sm:$0xff]  ;;  %v1266_v50 = vunpack.c.l.b16 %v1032_v38  ;;  %v886_v52 = vld [vmem:[#allocation5 + $0xe8] sm:$0xff]  ;;  %v1152_v54 = vpack.c.b16 %v1144_v43, %v1143_v42  ;;  %v998_v57 = vpack.c.bf16 %v870_v46, %v870_v46  ;;  %v917_v59 = vld [vmem:[#allocation5 + $0x1e0] sm:$0xff] }
  0x5c   : > { %v1204_v44 = vunpack.c.l.b16 %v1015_v33  ;;  %v1047_v45 = vpack.c.bf16 %v919_v39, %v919_v39  ;;  %v902_v58 = vld [vmem:[#allocation5 + $0x168] sm:$0xff]  ;;  %v1327_v62 = vunpack.c.l.b16 %v1048_v51  ;;  %v1014_v3 = vpack.c.bf16 %v886_v52, %v886_v52  ;;  %v867_v5 = vld [vmem:[#allocation5 + $0x50] sm:$0xff]  ;;  %v916_v31 = vld [vmem:[#allocation5 + $0x1d8] sm:$0xff] }
  0x5d   : > { %v1265_v49 = vunpack.c.l.b16 %v1031_v37  ;;  %v918_v0 = vld [vmem:[#allocation5 + $0x1e8] sm:$0xff]  ;;  %1161 = vmatpush.bf16.msra.mxu2 %v1152_v54  ;;  %v1142_v2 = vunpack.c.l.b16 %v998_v57  ;;  %v1029_v4 = vpack.c.bf16 %v901_v53, %v901_v53  ;;  %v899_v17 = vld [vmem:[#allocation5 + $0x150] sm:$0xff]  ;;  %v865_v36 = vld [vmem:[#allocation5 + $0x40] sm:$0xff]  ;;  %v1044_v47 = vpack.c.bf16 %v916_v31, %v916_v31 }
  0x5e   : > { %748 = vmatpush.bf16.msra.mxu0 %v3305_v6  ;;  %v1326_v55 = vunpack.c.l.b16 %v1047_v45  ;;  %v1213_v60 = vpack.c.b16 %v1205_v48, %v1204_v44  ;;  %v868_v6 = vld [vmem:[#allocation5 + $0x58] sm:$0xff]  ;;  %v1046_v16 = vpack.c.bf16 %v918_v0, %v918_v0  ;;  %v915_v30 = vld [vmem:[#allocation5 + $0x1d0] sm:$0xff]  ;;  %v1027_v35 = vpack.c.bf16 %v899_v17, %v899_v17  ;;  %v866_v37 = vld [vmem:[#allocation5 + $0x48] sm:$0xff] }
  0x5f   : > { %809 = vmatpush.bf16.msra.mxu1 %v3297_v7  ;;  %v1274_v61 = vpack.c.b16 %v1266_v50, %v1265_v49  ;;  %v881_v42 = vld [vmem:[#allocation5 + $0xc0] sm:$0xff]  ;;  %v882_v43 = vld [vmem:[#allocation5 + $0xc8] sm:$0xff]  ;;  %v1043_v46 = vpack.c.bf16 %v915_v30, %v915_v30  ;;  %v993_v51 = vpack.c.bf16 %v865_v36, %v865_v36  ;;  %v994_v52 = vpack.c.bf16 %v866_v37, %v866_v37  ;;  %v863_v0 = vld [vmem:[#allocation5 + $0x30] sm:$0xff] }
  0x60   : > { %1222 = vmatpush.bf16.msra.mxu3 %v1213_v60  ;;  %v1335_v7 = vpack.c.b16 %v1327_v62, %v1326_v55  ;;  %v1325_v27 = vunpack.c.l.b16 %v1046_v16  ;;  %v1261_v45 = vunpack.c.l.b16 %v1027_v35  ;;  %v897_v48 = vld [vmem:[#allocation5 + $0x140] sm:$0xff]  ;;  %v898_v53 = vld [vmem:[#allocation5 + $0x148] sm:$0xff]  ;;  %v1323_v55 = vunpack.c.l.b16 %v1044_v47  ;;  %v895_v17 = vld [vmem:[#allocation5 + $0x130] sm:$0xff] }
  0x61   : > { %v1322_v54 = vunpack.c.l.b16 %v1043_v46  ;;  %v1009_v56 = vpack.c.bf16 %v881_v42, %v881_v42  ;;  %v1010_v57 = vpack.c.bf16 %v882_v43, %v882_v43  ;;  %v1138_v62 = vunpack.c.l.b16 %v994_v52  ;;  %v912_v31 = vld [vmem:[#allocation5 + $0x1b8] sm:$0xff]  ;;  %v862_v37 = vld [vmem:[#allocation5 + $0x28] sm:$0xff]  ;;  %v893_v46 = vld [vmem:[#allocation5 + $0x120] sm:$0xff] }
  0x62   : > { %749 = vmatpush.bf16.msra.mxu0 %v3304_v8  ;;  %v1202_v8 = vunpack.c.l.b16 %v1013_v63  ;;  %v1025_v63 = vpack.c.bf16 %v897_v48, %v897_v48  ;;  %v1023_v36 = vpack.c.bf16 %v895_v17, %v895_v17  ;;  %v878_v42 = vld [vmem:[#allocation5 + $0xa8] sm:$0xff]  ;;  %v909_v52 = vld [vmem:[#allocation5 + $0x1a0] sm:$0xff]  ;;  %v907_v17 = vld [vmem:[#allocation5 + $0x190] sm:$0xff] }
  0x63   : > { %810 = vmatpush.bf16.msra.mxu1 %v3296_v9  ;;  %v1030_v9 = vpack.c.bf16 %v902_v58, %v902_v58  ;;  %v913_v58 = vld [vmem:[#allocation5 + $0x1c0] sm:$0xff]  ;;  %v894_v47 = vld [vmem:[#allocation5 + $0x128] sm:$0xff] }
  0x64   : > { %v1257_v43 = vunpack.c.l.b16 %v1023_v36  ;;  %v935_v36 = vld [vmem:[#allocation5 + $0x270] sm:$0xff] }
  0x66   : > { %750 = vmatpush.bf16.msra.mxu0 %v3303_v10  ;;  %v1045_v10 = vpack.c.bf16 %v917_v59, %v917_v59  ;;  %v914_v59 = vld [vmem:[#allocation5 + $0x1c8] sm:$0xff] }
  0x67   : > { %811 = vmatpush.bf16.msra.mxu1 %v3295_v11  ;;  %v883_v11 = vld [vmem:[#allocation5 + $0xd0] sm:$0xff] }
  0x68   : > { %v1011_v28 = vpack.c.bf16 %v883_v11, %v883_v11  ;;  %v880_v11 = vld [vmem:[#allocation5 + $0xb8] sm:$0xff] }
  0x69   : > { %v1008_v30 = vpack.c.bf16 %v880_v11, %v880_v11  ;;  %v892_v11 = vld [vmem:[#allocation5 + $0x118] sm:$0xff] }
  0x6a   : > { %751 = vmatpush.bf16.msra.mxu0 %v3302_v12  ;;  %v884_v12 = vld [vmem:[#allocation5 + $0xd8] sm:$0xff]  ;;  %v1200_v39 = vunpack.c.l.b16 %v1011_v28 }
  0x6b   : > { %812 = vmatpush.bf16.msra.mxu1 %v3294_v13  ;;  %v1151_v13 = vpack.c.b16 %v1142_v2, %v1141_v1  ;;  %v1012_v29 = vpack.c.bf16 %v884_v12, %v884_v12  ;;  %v864_v1 = vld [vmem:[#allocation5 + $0x38] sm:$0xff]  ;;  %v1333_v2 = vpack.c.b16 %v1323_v55, %v1322_v54 }
  0x6c   : > { %v992_v16 = vpack.c.bf16 %v864_v1, %v864_v1 }
  0x6d   : > { %1162 = vmatpush.bf16.msra.mxu2 %v1151_v13  ;;  %v1201_v40 = vunpack.c.l.b16 %v1012_v29 }
  0x6e   : > { %752 = vmatpush.bf16.msra.mxu0 %v3301_v14  ;;  %v1203_v14 = vunpack.c.l.b16 %v1014_v3  ;;  %v1198_v3 = vunpack.c.l.b16 %v1009_v56  ;;  %v1136_v29 = vunpack.c.l.b16 %v992_v16  ;;  %v1006_v56 = vpack.c.bf16 %v878_v42, %v878_v42  ;;  %v874_v42 = vld [vmem:[#allocation5 + $0x88] sm:$0xff] }
  0x6f   : > { %813 = vmatpush.bf16.msra.mxu1 %v3293_v15  ;;  %v1263_v15 = vunpack.c.l.b16 %v1029_v4  ;;  %v1211_v49 = vpack.c.b16 %v1201_v40, %v1200_v39  ;;  %v1199_v4 = vunpack.c.l.b16 %v1010_v57  ;;  %v910_v57 = vld [vmem:[#allocation5 + $0x1a8] sm:$0xff] }
  0x71   : > { %753 = vmatmul.bf16.vlgmr.msra.gmra.mxu0 %v4135_v18  ;;  %v1210_v13 = vpack.c.b16 %v1199_v4, %v1198_v3  ;;  %v1037_v3 = vpack.c.bf16 %v909_v52, %v909_v52  ;;  %v875_v4 = vld [vmem:[#allocation5 + $0x90] sm:$0xff]  ;;  %v890_v52 = vld [vmem:[#allocation5 + $0x108] sm:$0xff] }
  0x72   : > { %814 = vmatmul.bf16.vlgmr.msra.gmra.mxu1 %v4137_v19  ;;  %1283 = vmatpush.bf16.msrb.mxu0 %v1274_v61  ;;  %v1137_v61 = vunpack.c.l.b16 %v993_v51  ;;  %v990_v51 = vpack.c.bf16 %v862_v37, %v862_v37  ;;  %v936_v37 = vld [vmem:[#allocation5 + $0x278] sm:$0xff] }
  0x73   : > { %1344 = vmatpush.bf16.msrb.mxu1 %v1335_v7 }
  0x74   : > { %v1149_v7 = vpack.c.b16 %v1138_v62, %v1137_v61  ;;  %v1022_v61 = vpack.c.bf16 %v894_v47, %v894_v47  ;;  %v859_v62 = vld [vmem:[#allocation5 + $0x10] sm:$0xff]  ;;  %v889_v47 = vld [vmem:[#allocation5 + $0x100] sm:$0xff] }
  0xee   : > { %v754_v21 = vpop.f32.mrf.mxu0 }
  0xef   : > { %v815_v22 = vpop.f32.mrf.mxu1 }
  0xf0   : > { %v816_v23 = vadd.f32 %v815_v22, %v754_v21  ;;  %v1324_v21 = vunpack.c.l.b16 %v1045_v10  ;;  %v995_v22 = vpack.c.bf16 %v867_v5, %v867_v5  ;;  %v1026_v5 = vpack.c.bf16 %v898_v53, %v898_v53 }
  0xf1   : > { %v1042_v10 = vpack.c.bf16 %v914_v59, %v914_v59  ;;  %v1134_v59 = vunpack.c.l.b16 %v990_v51  ;;  %v1064_v51 = vpack.c.bf16 %v936_v37, %v936_v37 }
  0xf2   : > { %v4144_v24 = vadd.f32 %v3515_v20, %v816_v23  ;;  %v1264_v20 = vunpack.c.l.b16 %v1030_v9  ;;  %v996_v23 = vpack.c.bf16 %v868_v6, %v868_v6  ;;  %v1139_v33 = vunpack.c.l.b16 %v995_v22  ;;  %v879_v6 = vld [vmem:[#allocation5 + $0xb0] sm:$0xff] }
  0xf3   : > { %v1334_v38 = vpack.c.b16 %v1325_v27, %v1324_v21  ;;  %v1041_v9 = vpack.c.bf16 %v913_v58, %v913_v58  ;;  %v1321_v22 = vunpack.c.l.b16 %v1042_v10  ;;  %v891_v10 = vld [vmem:[#allocation5 + $0x110] sm:$0xff] }
  0xf4   : > { %824 = vmax.xlane.f32.xlu0 %v4144_v24  ;;  %v1273_v32 = vpack.c.b16 %v1264_v20, %v1263_v15  ;;  %v1140_v34 = vunpack.c.l.b16 %v996_v23  ;;  %v991_v15 = vpack.c.bf16 %v863_v0, %v863_v0  ;;  %v1007_v23 = vpack.c.bf16 %v879_v6, %v879_v6 }
  0xf5   : > { %1345 = vmatpush.bf16.msrb.mxu1 %v1334_v38  ;;  %v1320_v21 = vunpack.c.l.b16 %v1041_v9  ;;  %v1197_v38 = vunpack.c.l.b16 %v1008_v30  ;;  %v1038_v9 = vpack.c.bf16 %v910_v57, %v910_v57  ;;  %v857_v30 = vld [vmem:[#allocation5] sm:$0xff] }
  0xf6   : > { %v756_v25 = vpop.f32.mrf.mxu0  ;;  %1284 = vmatpush.bf16.msrb.mxu0 %v1273_v32  ;;  %v1150_v44 = vpack.c.b16 %v1140_v34, %v1139_v33  ;;  %v1135_v28 = vunpack.c.l.b16 %v991_v15  ;;  %v861_v32 = vld [vmem:[#allocation5 + $0x20] sm:$0xff]  ;;  %v1196_v35 = vunpack.c.l.b16 %v1007_v23  ;;  %v987_v15 = vpack.c.bf16 %v859_v62, %v859_v62 }
  0xf7   : > { %v817_v26 = vpop.f32.mrf.mxu1  ;;  %v900_v25 = vld [vmem:[#allocation5 + $0x158] sm:$0xff]  ;;  %v1332_v34 = vpack.c.b16 %v1321_v22, %v1320_v21  ;;  %v1317_v21 = vunpack.c.l.b16 %v1038_v9  ;;  %v1003_v22 = vpack.c.bf16 %v875_v4, %v875_v4  ;;  %v905_v57 = vld [vmem:[#allocation5 + $0x180] sm:$0xff]  ;;  %v1017_v62 = vpack.c.bf16 %v889_v47, %v889_v47 }
  0xf8   : > { %v1212_v26 = vpack.c.b16 %v1203_v14, %v1202_v8  ;;  %v1028_v41 = vpack.c.bf16 %v900_v25, %v900_v25  ;;  %1163 = vmatpush.bf16.msra.mxu2 %v1150_v44  ;;  %v1259_v8 = vunpack.c.l.b16 %v1025_v63  ;;  %v1260_v14 = vunpack.c.l.b16 %v1026_v5  ;;  %v896_v25 = vld [vmem:[#allocation5 + $0x138] sm:$0xff] }
  0xf9   : > { %1346 = vmatpush.bf16.msrb.mxu1 %v1333_v2  ;;  %v1024_v39 = vpack.c.bf16 %v896_v25, %v896_v25  ;;  %v1040_v44 = vpack.c.bf16 %v912_v31, %v912_v31  ;;  %v1209_v48 = vpack.c.b16 %v1197_v38, %v1196_v35  ;;  %v860_v63 = vld [vmem:[#allocation5 + $0x18] sm:$0xff]  ;;  %v1195_v2 = vunpack.c.l.b16 %v1006_v56  ;;  %v858_v31 = vld [vmem:[#allocation5 + $0x8] sm:$0xff] }
  0xfa   : > { %1223 = vmatpush.bf16.msra.mxu3 %v1212_v26  ;;  %v1262_v50 = vunpack.c.l.b16 %v1028_v41  ;;  %v911_v26 = vld [vmem:[#allocation5 + $0x1b0] sm:$0xff]  ;;  %v1271_v27 = vpack.c.b16 %v1260_v14, %v1259_v8  ;;  %v877_v41 = vld [vmem:[#allocation5 + $0xa0] sm:$0xff]  ;;  %v876_v5 = vld [vmem:[#allocation5 + $0x98] sm:$0xff]  ;;  %v1256_v8 = vunpack.c.l.b16 %v1022_v61  ;;  %v1316_v14 = vunpack.c.l.b16 %v1037_v3 }
  0xfb   : > { %v1039_v40 = vpack.c.bf16 %v911_v26, %v911_v26  ;;  %v1319_v53 = vunpack.c.l.b16 %v1040_v44  ;;  %v1005_v55 = vpack.c.bf16 %v877_v41, %v877_v41  ;;  %v988_v16 = vpack.c.bf16 %v860_v63, %v860_v63  ;;  %v908_v25 = vld [vmem:[#allocation5 + $0x198] sm:$0xff]  ;;  %v873_v41 = vld [vmem:[#allocation5 + $0x80] sm:$0xff]  ;;  %v951_v63 = vld [vmem:[#allocation5 + $0x2f0] sm:$0xff] }
  0xfc   : > { %v1272_v60 = vpack.c.b16 %v1262_v50, %v1261_v45  ;;  %1164 = vmatpush.bf16.msra.mxu2 %v1149_v7  ;;  %v989_v45 = vpack.c.bf16 %v861_v32, %v861_v32  ;;  %v1004_v23 = vpack.c.bf16 %v876_v5, %v876_v5  ;;  %v1131_v26 = vunpack.c.l.b16 %v987_v15  ;;  %v967_v5 = vld [vmem:[#allocation5 + $0x370] sm:$0xff] }
  0xfd   : > { %1347 = vmatpush.bf16.msrb.mxu1 %v1332_v34  ;;  %v1318_v50 = vunpack.c.l.b16 %v1039_v40  ;;  %v1194_v1 = vunpack.c.l.b16 %v1005_v55  ;;  %v1330_v32 = vpack.c.b16 %v1317_v21, %v1316_v14  ;;  %v1035_v35 = vpack.c.bf16 %v907_v17, %v907_v17  ;;  %v984_v17 = vld [vmem:[#allocation5 + $0x3f8] sm:$0xff] }
  0xfe   : > { %1224 = vmatpush.bf16.msra.mxu3 %v1211_v49  ;;  %1285 = vmatpush.bf16.msrb.mxu0 %v1272_v60  ;;  %v1258_v49 = vunpack.c.l.b16 %v1024_v39  ;;  %v1133_v54 = vunpack.c.l.b16 %v989_v45  ;;  %v1021_v60 = vpack.c.bf16 %v893_v46, %v893_v46  ;;  %v1193_v34 = vunpack.c.l.b16 %v1004_v23 }
  0xff   : > { %v1331_v0 = vpack.c.b16 %v1319_v53, %v1318_v50  ;;  %v1036_v40 = vpack.c.bf16 %v908_v25, %v908_v25  ;;  %v1314_v44 = vunpack.c.l.b16 %v1035_v35  ;;  %v985_v45 = vpack.c.bf16 %v857_v30, %v857_v30 }
 0x100   : > { %v1270_v58 = vpack.c.b16 %v1258_v49, %v1257_v43  ;;  %v1147_v6 = vpack.c.b16 %v1134_v59, %v1133_v54  ;;  %v1255_v7 = vunpack.c.l.b16 %v1021_v60  ;;  %v986_v46 = vpack.c.bf16 %v858_v31, %v858_v31 }
 0x101   : > { %1348 = vmatpush.bf16.msrb.mxu1 %v1331_v0  ;;  %v1315_v49 = vunpack.c.l.b16 %v1036_v40  ;;  %v1063_v50 = vpack.c.bf16 %v935_v36, %v935_v36  ;;  %v1129_v53 = vunpack.c.l.b16 %v985_v45  ;;  %v1001_v55 = vpack.c.bf16 %v873_v41, %v873_v41  ;;  %v952_v0 = vld [vmem:[#allocation5 + $0x2f8] sm:$0xff]  ;;  %v949_v41 = vld [vmem:[#allocation5 + $0x2e0] sm:$0xff] }
 0x102   : > { %1225 = vmatpush.bf16.msra.mxu3 %v1210_v13  ;;  %1286 = vmatpush.bf16.msrb.mxu0 %v1271_v27  ;;  %v1208_v13 = vpack.c.b16 %v1195_v2, %v1194_v1  ;;  %v1132_v27 = vunpack.c.l.b16 %v988_v16  ;;  %v1130_v54 = vunpack.c.l.b16 %v986_v46  ;;  %v1002_v56 = vpack.c.bf16 %v874_v42, %v874_v42  ;;  %v950_v42 = vld [vmem:[#allocation5 + $0x2e8] sm:$0xff] }
 0x103   : > { %v1329_v59 = vpack.c.b16 %v1315_v49, %v1314_v44  ;;  %v1387_v60 = vunpack.c.l.b16 %v1063_v50  ;;  %v1388_v61 = vunpack.c.l.b16 %v1064_v51  ;;  %v1190_v2 = vunpack.c.l.b16 %v1001_v55  ;;  %v981_v49 = vld [vmem:[#allocation5 + $0x3e0] sm:$0xff]  ;;  %v982_v50 = vld [vmem:[#allocation5 + $0x3e8] sm:$0xff]  ;;  %v931_v55 = vld [vmem:[#allocation5 + $0x250] sm:$0xff] }
 0x104   : > { %v1145_v1 = vpack.c.b16 %v1130_v54, %v1129_v53  ;;  %v1191_v3 = vunpack.c.l.b16 %v1002_v56  ;;  %v1018_v4 = vpack.c.bf16 %v890_v52, %v890_v52  ;;  %v1033_v9 = vpack.c.bf16 %v905_v57, %v905_v57  ;;  %v932_v56 = vld [vmem:[#allocation5 + $0x258] sm:$0xff] }
 0x105   : > { %1349 = vmatpush.bf16.msrb.mxu1 %v1330_v32  ;;  %v1079_v15 = vpack.c.bf16 %v951_v63, %v951_v63  ;;  %v1080_v16 = vpack.c.bf16 %v952_v0, %v952_v0  ;;  %v1112_v32 = vpack.c.bf16 %v984_v17, %v984_v17  ;;  %v1077_v46 = vpack.c.bf16 %v949_v41, %v949_v41  ;;  %v930_v17 = vld [vmem:[#allocation5 + $0x248] sm:$0xff] }
 0x106   : > { %1226 = vmatpush.bf16.msra.mxu3 %v1209_v48  ;;  %1287 = vmatpush.bf16.msrb.mxu0 %v1270_v58  ;;  %v906_v58 = vld [vmem:[#allocation5 + $0x188] sm:$0xff]  ;;  %v1252_v14 = vunpack.c.l.b16 %v1018_v4  ;;  %v1078_v47 = vpack.c.bf16 %v950_v42, %v950_v42  ;;  %v1109_v53 = vpack.c.bf16 %v981_v49, %v981_v49  ;;  %v1110_v54 = vpack.c.bf16 %v982_v50, %v982_v50 }
 0x107   : > { %v1571_v36 = vunpack.c.l.b16 %v1112_v32  ;;  %v978_v41 = vld [vmem:[#allocation5 + $0x3c8] sm:$0xff] }
 0x108   : > { %v1568_v63 = vunpack.c.l.b16 %v1109_v53  ;;  %v1569_v0 = vunpack.c.l.b16 %v1110_v54 }
 0x109   : > { %1350 = vmatpush.bf16.msrb.mxu1 %v1329_v59  ;;  %v1447_v59 = vunpack.c.l.b16 %v1078_v47  ;;  %v928_v47 = vld [vmem:[#allocation5 + $0x238] sm:$0xff] }
 0x10a   : > { %1227 = vmatpush.bf16.msra.mxu3 %v1208_v13  ;;  %v1206_v13 = vpack.c.b16 %v1191_v3, %v1190_v2  ;;  %v948_v2 = vld [vmem:[#allocation5 + $0x2d8] sm:$0xff]  ;;  %v963_v3 = vld [vmem:[#allocation5 + $0x350] sm:$0xff] }
 0x167   : > { %v825_v12 = vpop.xlane.xlu0 %824 }
 0x168   : > { %v826_v20 = vsub.f32 %v4144_v24, %v825_v12  ;;  %v1148_v24 = vpack.c.b16 %v1136_v29, %v1135_v28  ;;  %v1019_v28 = vpack.c.bf16 %v891_v10, %v891_v10  ;;  %v1020_v29 = vpack.c.bf16 %v892_v11, %v892_v11  ;;  %v983_v11 = vld [vmem:[#allocation5 + $0x3f0] sm:$0xff] }
 0x169   : > { %v1034_v10 = vpack.c.bf16 %v906_v58, %v906_v58  ;;  %v1446_v58 = vunpack.c.l.b16 %v1077_v46  ;;  %v927_v46 = vld [vmem:[#allocation5 + $0x230] sm:$0xff] }
 0x16a   : > { %v827_v33 = vmul.f32 1.442695, %v826_v20  ;;  %1165 = vmatpush.bf16.msra.mxu2 %v1148_v24  ;;  %v1269_v20 = vpack.c.b16 %v1256_v8, %v1255_v7  ;;  %v1146_v24 = vpack.c.b16 %v1132_v27, %v1131_v26  ;;  %v1253_v38 = vunpack.c.l.b16 %v1019_v28 }
 0x16b   : > { %v1254_v39 = vunpack.c.l.b16 %v1020_v29  ;;  %v1396_v7 = vpack.c.b16 %v1388_v61, %v1387_v60  ;;  %v1251_v8 = vunpack.c.l.b16 %v1017_v62  ;;  %v1313_v21 = vunpack.c.l.b16 %v1034_v10  ;;  %v980_v10 = vld [vmem:[#allocation5 + $0x3d8] sm:$0xff] }
 0x16c   : > { %3521 = vpow2.f32 %v827_v33  ;;  %1288 = vmatpush.bf16.msrb.mxu0 %v1269_v20  ;;  %v1192_v33 = vunpack.c.l.b16 %v1003_v22  ;;  %v1312_v20 = vunpack.c.l.b16 %v1033_v9  ;;  %v1095_v22 = vpack.c.bf16 %v967_v5, %v967_v5  ;;  %v979_v9 = vld [vmem:[#allocation5 + $0x3d0] sm:$0xff] }
 0x16d   : > { %v1268_v48 = vpack.c.b16 %v1254_v39, %v1253_v38  ;;  %v1267_v25 = vpack.c.b16 %v1252_v14, %v1251_v8  ;;  %v1448_v26 = vunpack.c.l.b16 %v1079_v15  ;;  %v1449_v27 = vunpack.c.l.b16 %v1080_v16  ;;  %v934_v38 = vld [vmem:[#allocation5 + $0x268] sm:$0xff]  ;;  %v964_v8 = vld [vmem:[#allocation5 + $0x358] sm:$0xff]  ;;  %v929_v16 = vld [vmem:[#allocation5 + $0x240] sm:$0xff] }
 0x16e   : > { %1166 = vmatpush.bf16.msra.mxu2 %v1147_v6  ;;  %v1207_v43 = vpack.c.b16 %v1193_v34, %v1192_v33  ;;  %v968_v6 = vld [vmem:[#allocation5 + $0x378] sm:$0xff]  ;;  %v1111_v28 = vpack.c.bf16 %v983_v11, %v983_v11  ;;  %v1328_v29 = vpack.c.b16 %v1313_v21, %v1312_v20  ;;  %v1509_v30 = vunpack.c.l.b16 %v1095_v22 }
 0x16f   : > { %v1096_v23 = vpack.c.bf16 %v968_v6, %v968_v6  ;;  %v1457_v33 = vpack.c.b16 %v1449_v27, %v1448_v26  ;;  %v1062_v40 = vpack.c.bf16 %v934_v38, %v934_v38  ;;  %v1059_v60 = vpack.c.bf16 %v931_v55, %v931_v55 }
 0x170   : > { %1228 = vmatpush.bf16.msra.mxu3 %v1207_v43  ;;  %1289 = vmatpush.bf16.msrb.mxu0 %v1268_v48  ;;  %v1570_v34 = vunpack.c.l.b16 %v1111_v28  ;;  %v965_v43 = vld [vmem:[#allocation5 + $0x360] sm:$0xff]  ;;  %v966_v48 = vld [vmem:[#allocation5 + $0x368] sm:$0xff]  ;;  %v1456_v4 = vpack.c.b16 %v1447_v59, %v1446_v58  ;;  %v1060_v5 = vpack.c.bf16 %v932_v56, %v932_v56  ;;  %v1076_v14 = vpack.c.bf16 %v948_v2, %v948_v2  ;;  %v943_v56 = vld [vmem:[#allocation5 + $0x2b0] sm:$0xff] }
 0x171   : > { %v1510_v31 = vunpack.c.l.b16 %v1096_v23  ;;  %1351 = vmatpush.bf16.msrb.mxu1 %v1328_v29  ;;  %v1386_v45 = vunpack.c.l.b16 %v1062_v40  ;;  %v1093_v51 = vpack.c.bf16 %v965_v43, %v965_v43  ;;  %v1094_v52 = vpack.c.bf16 %v966_v48, %v966_v48  ;;  %v945_v29 = vld [vmem:[#allocation5 + $0x2c0] sm:$0xff]  ;;  %v959_v58 = vld [vmem:[#allocation5 + $0x330] sm:$0xff] }
 0x172   : > { %v4148_v12 = vpop.eup %3521  ;;  %1167 = vmatpush.bf16.msra.mxu2 %v1146_v24  ;;  %v1579_v37 = vpack.c.b16 %v1571_v36, %v1570_v34  ;;  %v933_v24 = vld [vmem:[#allocation5 + $0x260] sm:$0xff]  ;;  %v1383_v6 = vunpack.c.l.b16 %v1059_v60  ;;  %v1091_v15 = vpack.c.bf16 %v963_v3, %v963_v3  ;;  %v1384_v20 = vunpack.c.l.b16 %v1060_v5  ;;  %v962_v36 = vld [vmem:[#allocation5 + $0x348] sm:$0xff]  ;;  %v976_v5 = vld [vmem:[#allocation5 + $0x3b8] sm:$0xff] }
 0x173   : > { %829 = vadd.xlane.f32.xlu0 %v4148_v12  ;;  %v1518_v35 = vpack.c.b16 %v1510_v31, %v1509_v30  ;;  %v1061_v39 = vpack.c.bf16 %v933_v24, %v933_v24  ;;  %v1507_v61 = vunpack.c.l.b16 %v1093_v51  ;;  %v1508_v62 = vunpack.c.l.b16 %v1094_v52  ;;  %v946_v30 = vld [vmem:[#allocation5 + $0x2c8] sm:$0xff]  ;;  %v961_v31 = vld [vmem:[#allocation5 + $0x340] sm:$0xff] }
 0x174   : > { %1229 = vmatpush.bf16.msra.mxu3 %v1206_v13  ;;  %1290 = vmatpush.bf16.msrb.mxu0 %v1267_v25  ;;  %v1578_v13 = vpack.c.b16 %v1569_v0, %v1568_v63  ;;  %v1092_v22 = vpack.c.bf16 %v964_v8, %v964_v8  ;;  %v1107_v23 = vpack.c.bf16 %v979_v9, %v979_v9  ;;  %v1445_v25 = vunpack.c.l.b16 %v1076_v14  ;;  %v960_v63 = vld [vmem:[#allocation5 + $0x338] sm:$0xff] }
 0x175   : > { %1588 = vmatpush.bf16.msra.mxu1 %v1579_v37  ;;  %v1385_v44 = vunpack.c.l.b16 %v1061_v39  ;;  %v1517_v11 = vpack.c.b16 %v1508_v62, %v1507_v61  ;;  %v1505_v26 = vunpack.c.l.b16 %v1091_v15  ;;  %v1108_v27 = vpack.c.bf16 %v980_v10, %v980_v10  ;;  %v977_v37 = vld [vmem:[#allocation5 + $0x3c0] sm:$0xff] }
 0x176   : > { %1168 = vmatpush.bf16.msra.mxu2 %v1145_v1  ;;  %v947_v1 = vld [vmem:[#allocation5 + $0x2d0] sm:$0xff]  ;;  %v1057_v28 = vpack.c.bf16 %v929_v16, %v929_v16  ;;  %v1394_v32 = vpack.c.b16 %v1384_v20, %v1383_v6  ;;  %v1566_v34 = vunpack.c.l.b16 %v1107_v23  ;;  %v1073_v40 = vpack.c.bf16 %v945_v29, %v945_v29  ;;  %v925_v10 = vld [vmem:[#allocation5 + $0x220] sm:$0xff]  ;;  %v942_v20 = vld [vmem:[#allocation5 + $0x2a8] sm:$0xff] }
 0x177   : > { %v1395_v57 = vpack.c.b16 %v1386_v45, %v1385_v44  ;;  %v1567_v38 = vunpack.c.l.b16 %v1108_v27  ;;  %v1074_v44 = vpack.c.bf16 %v946_v30, %v946_v30  ;;  %v1089_v45 = vpack.c.bf16 %v961_v31, %v961_v31  ;;  %v958_v31 = vld [vmem:[#allocation5 + $0x328] sm:$0xff] }
 0x178   : > { %1466 = vmatpush.bf16.msrb.mxu3 %v1457_v33  ;;  %1527 = vmatpush.bf16.msra.mxu0 %v1518_v35  ;;  %v1506_v33 = vunpack.c.l.b16 %v1092_v22  ;;  %v1058_v35 = vpack.c.bf16 %v930_v17, %v930_v17  ;;  %v1381_v39 = vunpack.c.l.b16 %v1057_v28  ;;  %v1442_v49 = vunpack.c.l.b16 %v1073_v40  ;;  %v941_v17 = vld [vmem:[#allocation5 + $0x2a0] sm:$0xff] }
 0x179   : > { %1589 = vmatpush.bf16.msra.mxu1 %v1578_v13  ;;  %v1577_v48 = vpack.c.b16 %v1567_v38, %v1566_v34  ;;  %v1090_v50 = vpack.c.bf16 %v962_v36, %v962_v36  ;;  %v1105_v51 = vpack.c.bf16 %v977_v37, %v977_v37  ;;  %v1443_v53 = vunpack.c.l.b16 %v1074_v44  ;;  %v973_v36 = vld [vmem:[#allocation5 + $0x3a0] sm:$0xff]  ;;  %v974_v37 = vld [vmem:[#allocation5 + $0x3a8] sm:$0xff] }
 0x17a   : > { %1405 = vmatpush.bf16.msrb.mxu2 %v1396_v7  ;;  %v1075_v7 = vpack.c.bf16 %v947_v1, %v947_v1  ;;  %v1516_v42 = vpack.c.b16 %v1506_v33, %v1505_v26  ;;  %v1382_v43 = vunpack.c.l.b16 %v1058_v35  ;;  %v1503_v54 = vunpack.c.l.b16 %v1089_v45  ;;  %v957_v26 = vld [vmem:[#allocation5 + $0x320] sm:$0xff] }
 0x17b   : > { %v1106_v55 = vpack.c.bf16 %v978_v41, %v978_v41  ;;  %v1504_v59 = vunpack.c.l.b16 %v1090_v50  ;;  %v1564_v60 = vunpack.c.l.b16 %v1105_v51  ;;  %v1055_v61 = vpack.c.bf16 %v927_v46, %v927_v46  ;;  %v923_v41 = vld [vmem:[#allocation5 + $0x210] sm:$0xff] }
 0x17c   : > { %1467 = vmatpush.bf16.msrb.mxu3 %v1456_v4  ;;  %v1444_v21 = vunpack.c.l.b16 %v1075_v7  ;;  %1528 = vmatpush.bf16.msra.mxu0 %v1517_v11  ;;  %v1393_v52 = vpack.c.b16 %v1382_v43, %v1381_v39  ;;  %v1056_v62 = vpack.c.bf16 %v928_v47, %v928_v47  ;;  %v1454_v0 = vpack.c.b16 %v1443_v53, %v1442_v49  ;;  %v975_v4 = vld [vmem:[#allocation5 + $0x3b0] sm:$0xff]  ;;  %v926_v11 = vld [vmem:[#allocation5 + $0x228] sm:$0xff] }
 0x17d   : > { %1590 = vmatpush.bf16.msra.mxu1 %v1577_v48  ;;  %v1565_v1 = vunpack.c.l.b16 %v1106_v55  ;;  %v1071_v2 = vpack.c.bf16 %v943_v56, %v943_v56  ;;  %v1515_v6 = vpack.c.b16 %v1504_v59, %v1503_v54  ;;  %v1379_v7 = vunpack.c.l.b16 %v1055_v61  ;;  %v939_v47 = vld [vmem:[#allocation5 + $0x290] sm:$0xff]  ;;  %v940_v48 = vld [vmem:[#allocation5 + $0x298] sm:$0xff] }
 0x17e   : > { %1406 = vmatpush.bf16.msrb.mxu2 %v1395_v57  ;;  %v1455_v24 = vpack.c.b16 %v1445_v25, %v1444_v21  ;;  %v944_v57 = vld [vmem:[#allocation5 + $0x2b8] sm:$0xff]  ;;  %v1380_v8 = vunpack.c.l.b16 %v1056_v62  ;;  %v1087_v9 = vpack.c.bf16 %v959_v58, %v959_v58  ;;  %v1088_v16 = vpack.c.bf16 %v960_v63, %v960_v63  ;;  %v955_v53 = vld [vmem:[#allocation5 + $0x310] sm:$0xff] }
 0x17f   : > { %v1072_v3 = vpack.c.bf16 %v944_v57, %v944_v57  ;;  %v1576_v13 = vpack.c.b16 %v1565_v1, %v1564_v60  ;;  %v1440_v14 = vunpack.c.l.b16 %v1071_v2  ;;  %v1103_v23 = vpack.c.bf16 %v975_v4, %v975_v4  ;;  %v956_v58 = vld [vmem:[#allocation5 + $0x318] sm:$0xff]  ;;  %v971_v63 = vld [vmem:[#allocation5 + $0x390] sm:$0xff] }
 0x180   : > { %1468 = vmatpush.bf16.msrb.mxu3 %v1455_v24  ;;  %1529 = vmatpush.bf16.msra.mxu0 %v1516_v42  ;;  %v1392_v21 = vpack.c.b16 %v1380_v8, %v1379_v7  ;;  %v1501_v22 = vunpack.c.l.b16 %v1087_v9  ;;  %v1104_v25 = vpack.c.bf16 %v976_v5, %v976_v5  ;;  %v1502_v28 = vunpack.c.l.b16 %v1088_v16  ;;  %v924_v42 = vld [vmem:[#allocation5 + $0x218] sm:$0xff]  ;;  %v921_v5 = vld [vmem:[#allocation5 + $0x200] sm:$0xff] }
 0x181   : > { %v1441_v15 = vunpack.c.l.b16 %v1072_v3  ;;  %1591 = vmatpush.bf16.msra.mxu1 %v1576_v13  ;;  %v1053_v29 = vpack.c.bf16 %v925_v10, %v925_v10  ;;  %v1054_v30 = vpack.c.bf16 %v926_v11, %v926_v11  ;;  %v1069_v34 = vpack.c.bf16 %v941_v17, %v941_v17  ;;  %v937_v11 = vld [vmem:[#allocation5 + $0x280] sm:$0xff]  ;;  %v938_v13 = vld [vmem:[#allocation5 + $0x288] sm:$0xff] }
 0x182   : > { %1407 = vmatpush.bf16.msrb.mxu2 %v1394_v32  ;;  %v1562_v32 = vunpack.c.l.b16 %v1103_v23  ;;  %v1563_v33 = vunpack.c.l.b16 %v1104_v25  ;;  %v1070_v35 = vpack.c.bf16 %v942_v20, %v942_v20  ;;  %v1514_v24 = vpack.c.b16 %v1502_v28, %v1501_v22  ;;  %v953_v20 = vld [vmem:[#allocation5 + $0x300] sm:$0xff] }
 0x183   : > { %v1453_v27 = vpack.c.b16 %v1441_v15, %v1440_v14  ;;  %v1377_v38 = vunpack.c.l.b16 %v1053_v29  ;;  %v1378_v39 = vunpack.c.l.b16 %v1054_v30  ;;  %v1085_v40 = vpack.c.bf16 %v957_v26, %v957_v26  ;;  %v954_v26 = vld [vmem:[#allocation5 + $0x308] sm:$0xff] }
 0x184   : > { %1469 = vmatpush.bf16.msrb.mxu3 %v1454_v0  ;;  %1530 = vmatpush.bf16.msra.mxu0 %v1515_v6  ;;  %v1575_v43 = vpack.c.b16 %v1563_v33, %v1562_v32  ;;  %v1438_v44 = vunpack.c.l.b16 %v1069_v34  ;;  %v1439_v45 = vunpack.c.l.b16 %v1070_v35  ;;  %v1086_v46 = vpack.c.bf16 %v958_v31, %v958_v31  ;;  %v972_v0 = vld [vmem:[#allocation5 + $0x398] sm:$0xff]  ;;  %v922_v6 = vld [vmem:[#allocation5 + $0x208] sm:$0xff]  ;;  %v969_v31 = vld [vmem:[#allocation5 + $0x380] sm:$0xff] }
 0x185   : > { %v1391_v49 = vpack.c.b16 %v1378_v39, %v1377_v38  ;;  %v1499_v50 = vunpack.c.l.b16 %v1085_v40  ;;  %v1101_v51 = vpack.c.bf16 %v973_v36, %v973_v36  ;;  %v1051_v56 = vpack.c.bf16 %v923_v41, %v923_v41  ;;  %v970_v32 = vld [vmem:[#allocation5 + $0x388] sm:$0xff] }
 0x186   : > { %1408 = vmatpush.bf16.msrb.mxu2 %v1393_v52  ;;  %v1102_v52 = vpack.c.bf16 %v974_v37, %v974_v37  ;;  %1592 = vmatpush.bf16.msra.mxu1 %v1575_v43  ;;  %v1452_v54 = vpack.c.b16 %v1439_v45, %v1438_v44  ;;  %v1500_v55 = vunpack.c.l.b16 %v1086_v46  ;;  %v1052_v57 = vpack.c.bf16 %v924_v42, %v924_v42 }
 0x187   : > { %v1560_v59 = vunpack.c.l.b16 %v1101_v51  ;;  %v1067_v61 = vpack.c.bf16 %v939_v47, %v939_v47  ;;  %v1068_v62 = vpack.c.bf16 %v940_v48, %v940_v48  ;;  %v1375_v2 = vunpack.c.l.b16 %v1051_v56 }
 0x188   : > { %1470 = vmatpush.bf16.msrb.mxu3 %v1453_v27  ;;  %1531 = vmatpush.bf16.msra.mxu0 %v1514_v24  ;;  %v1561_v60 = vunpack.c.l.b16 %v1102_v52  ;;  %v1513_v1 = vpack.c.b16 %v1500_v55, %v1499_v50  ;;  %v1376_v3 = vunpack.c.l.b16 %v1052_v57  ;;  %v1083_v4 = vpack.c.bf16 %v955_v53, %v955_v53  ;;  %v3316_v57 = vld [vmem:[#allocation10 + $0x38] sm:$0xff] }
 0x189   : > { %v1436_v8 = vunpack.c.l.b16 %v1067_v61  ;;  %v1437_v9 = vunpack.c.l.b16 %v1068_v62  ;;  %v1084_v10 = vpack.c.bf16 %v956_v58, %v956_v58  ;;  %v1099_v16 = vpack.c.bf16 %v971_v63, %v971_v63  ;;  %v3315_v61 = vld [vmem:[#allocation10 + $0x30] sm:$0xff] }
 0x18a   : > { %1409 = vmatpush.bf16.msrb.mxu2 %v1392_v21  ;;  %v1574_v7 = vpack.c.b16 %v1561_v60, %v1560_v59  ;;  %v1390_v14 = vpack.c.b16 %v1376_v3, %v1375_v2  ;;  %v1497_v15 = vunpack.c.l.b16 %v1083_v4  ;;  %v1100_v17 = vpack.c.bf16 %v972_v0, %v972_v0 }
 0x18b   : > { %v1451_v21 = vpack.c.b16 %v1437_v9, %v1436_v8  ;;  %v1498_v22 = vunpack.c.l.b16 %v1084_v10  ;;  %v1049_v23 = vpack.c.bf16 %v921_v5, %v921_v5  ;;  %v1050_v25 = vpack.c.bf16 %v922_v6, %v922_v6  ;;  %v3324_v5 = vld [vmem:[#allocation10 + $0x78] sm:$0xff]  ;;  %v3314_v6 = vld [vmem:[#allocation10 + $0x28] sm:$0xff]  ;;  %v3313_v8 = vld [vmem:[#allocation10 + $0x20] sm:$0xff] }
 0x18c   : > { %1471 = vmatpush.bf16.msrb.mxu3 %v1452_v54  ;;  %1532 = vmatpush.bf16.msra.mxu0 %v1513_v1  ;;  %v1558_v27 = vunpack.c.l.b16 %v1099_v16  ;;  %v1559_v28 = vunpack.c.l.b16 %v1100_v17  ;;  %v1065_v29 = vpack.c.bf16 %v937_v11, %v937_v11  ;;  %v1066_v30 = vpack.c.bf16 %v938_v13, %v938_v13  ;;  %v3322_v9 = vld [vmem:[#allocation10 + $0x68] sm:$0xff]  ;;  %v3312_v10 = vld [vmem:[#allocation10 + $0x18] sm:$0xff]  ;;  %v3321_v11 = vld [vmem:[#allocation10 + $0x60] sm:$0xff] }
 0x18d   : > { %1593 = vmatpush.bf16.msra.mxu1 %v1574_v7  ;;  %v1512_v33 = vpack.c.b16 %v1498_v22, %v1497_v15  ;;  %v1373_v34 = vunpack.c.l.b16 %v1049_v23  ;;  %v1374_v35 = vunpack.c.l.b16 %v1050_v25  ;;  %v1081_v36 = vpack.c.bf16 %v953_v20, %v953_v20  ;;  %v3323_v7 = vld [vmem:[#allocation10 + $0x70] sm:$0xff]  ;;  %v3310_v15 = vld [vmem:[#allocation10 + $0x8] sm:$0xff]  ;;  %v3309_v17 = vld [vmem:[#allocation10] sm:$0xff] }
 0x18e   : > { %1410 = vmatpush.bf16.msrb.mxu2 %v1391_v49  ;;  %v1573_v37 = vpack.c.b16 %v1559_v28, %v1558_v27  ;;  %v1434_v24 = vunpack.c.l.b16 %v1065_v29  ;;  %v1435_v38 = vunpack.c.l.b16 %v1066_v30  ;;  %v1082_v39 = vpack.c.bf16 %v954_v26, %v954_v26  ;;  %v3311_v13 = vld [vmem:[#allocation10 + $0x10] sm:$0xff]  ;;  %v3318_v20 = vld [vmem:[#allocation10 + $0x48] sm:$0xff]  ;;  %v3356_v25 = vld [vmem:[#allocation13 + $0x78] sm:$0xff] }
 0x18f   : > { %v1389_v40 = vpack.c.b16 %v1374_v35, %v1373_v34  ;;  %v1495_v41 = vunpack.c.l.b16 %v1081_v36  ;;  %v1097_v42 = vpack.c.bf16 %v969_v31, %v969_v31  ;;  %v1098_v43 = vpack.c.bf16 %v970_v32, %v970_v32  ;;  %v3319_v16 = vld [vmem:[#allocation10 + $0x50] sm:$0xff]  ;;  %v3340_v26 = vld [vmem:[#allocation13 + $0x38] sm:$0xff]  ;;  %v3354_v36 = vld [vmem:[#allocation13 + $0x68] sm:$0xff] }
 0x190   : > { %1472 = vmatpush.bf16.msrb.mxu3 %v1451_v21  ;;  %1533 = vmatpush.bf16.msra.mxu0 %v1512_v33  ;;  %v1450_v44 = vpack.c.b16 %v1435_v38, %v1434_v24  ;;  %v1496_v45 = vunpack.c.l.b16 %v1082_v39  ;;  %v3317_v21 = vld [vmem:[#allocation10 + $0x40] sm:$0xff]  ;;  %v3332_v27 = vld [vmem:[#allocation11 + $0x38] sm:$0xff]  ;;  %v3355_v30 = vld [vmem:[#allocation13 + $0x70] sm:$0xff] }
 0x191   : > { %1594 = vmatpush.bf16.msra.mxu1 %v1573_v37  ;;  %v1556_v46 = vunpack.c.l.b16 %v1097_v42  ;;  %v1557_v47 = vunpack.c.l.b16 %v1098_v43  ;;  %v3348_v28 = vld [vmem:[#allocation11 + $0x78] sm:$0xff]  ;;  %v3339_v31 = vld [vmem:[#allocation13 + $0x30] sm:$0xff]  ;;  %v3338_v37 = vld [vmem:[#allocation13 + $0x28] sm:$0xff] }
 0x192   : > { %1411 = vmatpush.bf16.msrb.mxu2 %v1390_v14  ;;  %v1511_v49 = vpack.c.b16 %v1496_v45, %v1495_v41  ;;  %v3320_v14 = vld [vmem:[#allocation10 + $0x58] sm:$0xff]  ;;  %v3331_v32 = vld [vmem:[#allocation11 + $0x30] sm:$0xff]  ;;  %v3330_v38 = vld [vmem:[#allocation11 + $0x28] sm:$0xff] }
 0x193   : > { %v1572_v50 = vpack.c.b16 %v1557_v47, %v1556_v46  ;;  %v3347_v33 = vld [vmem:[#allocation11 + $0x70] sm:$0xff]  ;;  %v3346_v39 = vld [vmem:[#allocation11 + $0x68] sm:$0xff]  ;;  %v3353_v42 = vld [vmem:[#allocation13 + $0x60] sm:$0xff] }
 0x194   : > { %1473 = vmatpush.bf16.msrb.mxu3 %v1450_v44  ;;  %1534 = vmatpush.bf16.msra.mxu0 %v1511_v49  ;;  %v3337_v43 = vld [vmem:[#allocation13 + $0x20] sm:$0xff] }
 0x195   : > { %1595 = vmatpush.bf16.msra.mxu1 %v1572_v50  ;;  %v3329_v45 = vld [vmem:[#allocation11 + $0x20] sm:$0xff] }
 0x196   : > { %1412 = vmatpush.bf16.msrb.mxu2 %v1389_v40  ;;  %v3345_v46 = vld [vmem:[#allocation11 + $0x60] sm:$0xff] }
 0x1e6   : > { %v830_v48 = vpop.xlane.xlu0 %829 }
 0x1e7   : > { %3523 = vrcp.f32 %v830_v48 }
 0x1ed   : > { %v3524_v51 = vpop.eup %3523 }
 0x1ee   : > { %v832_v52 = vmul.f32 %v3524_v51, %v4148_v12 }
 0x1f0   : > { %833 = vst [vmem:[#allocation19] sm:$0xff] %v832_v52  ;;  %v849_v53 = vpack.c.bf16 %v832_v52, %v832_v52  ;;  %v835_v54 = vrot.slane %v832_v52, 1  ;;  %v836_v55 = vrot.slane %v832_v52, 2  ;;  %v837_v56 = vrot.slane %v832_v52, 3 }
 0x1f1   : > { %v838_v62 = vrot.slane %v832_v52, 4  ;;  %v839_v63 = vrot.slane %v832_v52, 5  ;;  %v840_v0 = vrot.slane %v832_v52, 6  ;;  %v841_v12 = vrot.slane %v832_v52, 7  ;;  %v3352_v52 = vld [vmem:[#allocation13 + $0x58] sm:$0xff] }
 0x1f2   : > { %1169 = vmatmul.bf16.vlgmr.msra.gmra.mxu2 %v849_v53  ;;  %v850_v58 = vpack.c.bf16 %v835_v54, %v835_v54  ;;  %v851_v59 = vpack.c.bf16 %v836_v55, %v836_v55  ;;  %v852_v60 = vpack.c.bf16 %v837_v56, %v837_v56  ;;  %v3336_v53 = vld [vmem:[#allocation13 + $0x18] sm:$0xff] }
 0x1f3   : > { %v853_v1 = vpack.c.bf16 %v838_v62, %v838_v62  ;;  %v854_v2 = vpack.c.bf16 %v839_v63, %v839_v63  ;;  %v855_v3 = vpack.c.bf16 %v840_v0, %v840_v0  ;;  %v856_v4 = vpack.c.bf16 %v841_v12, %v841_v12  ;;  %1728 = vmatpush.bf16.msra.mxu2 %v3324_v5  ;;  %v3328_v56 = vld [vmem:[#allocation11 + $0x18] sm:$0xff]  ;;  %v3351_v63 = vld [vmem:[#allocation13 + $0x50] sm:$0xff] }
 0x1f4   : > { %1230 = vmatmul.bf16.vlgmr.msra.gmra.mxu3 %v850_v58  ;;  %1291 = vmatmul.bf16.vlgmr.msrb.gmra.mxu0 %v851_v59  ;;  %v3335_v0 = vld [vmem:[#allocation13 + $0x10] sm:$0xff] }
 0x1f5   : > { %1352 = vmatmul.bf16.vlgmr.msrb.gmra.mxu1 %v852_v60  ;;  %1789 = vmatpush.bf16.msra.mxu3 %v3316_v57  ;;  %v3344_v57 = vld [vmem:[#allocation11 + $0x58] sm:$0xff] }
 0x1f6   : > { %1889 = vmatpush.bf16.msrb.mxu0 %v3340_v26  ;;  %1950 = vmatpush.bf16.msrb.mxu1 %v3332_v27 }
 0x1f7   : > { %1729 = vmatpush.bf16.msra.mxu2 %v3323_v7 }
 0x1f9   : > { %1790 = vmatpush.bf16.msra.mxu3 %v3315_v61 }
 0x1fa   : > { %1890 = vmatpush.bf16.msrb.mxu0 %v3339_v31  ;;  %1951 = vmatpush.bf16.msrb.mxu1 %v3331_v32 }
 0x1fb   : > { %1730 = vmatpush.bf16.msra.mxu2 %v3322_v9 }
 0x1fd   : > { %1791 = vmatpush.bf16.msra.mxu3 %v3314_v6 }
 0x1fe   : > { %1891 = vmatpush.bf16.msrb.mxu0 %v3338_v37  ;;  %1952 = vmatpush.bf16.msrb.mxu1 %v3330_v38  ;;  %v3333_v37 = vld [vmem:[#allocation13] sm:$0xff] }
 0x1ff   : > { %1731 = vmatpush.bf16.msra.mxu2 %v3321_v11  ;;  %v3341_v38 = vld [vmem:[#allocation11 + $0x40] sm:$0xff] }
 0x201   : > { %1792 = vmatpush.bf16.msra.mxu3 %v3313_v8 }
 0x202   : > { %1413 = vmatmul.bf16.vlgmr.msrb.gmra.mxu2 %v853_v1  ;;  %1892 = vmatpush.bf16.msrb.mxu0 %v3337_v43  ;;  %v3371_v43 = vld [vmem:[#allocation13 + $0xb0] sm:$0xff] }
 0x203   : > { %1732 = vmatpush.bf16.msra.mxu2 %v3320_v14  ;;  %1953 = vmatpush.bf16.msrb.mxu1 %v3329_v45  ;;  %v3334_v14 = vld [vmem:[#allocation13 + $0x8] sm:$0xff]  ;;  %v3385_v45 = vld [vmem:[#allocation13 + $0xe0] sm:$0xff] }
 0x204   : > { %1474 = vmatmul.bf16.vlgmr.msrb.gmra.mxu3 %v854_v2  ;;  %1535 = vmatmul.bf16.vlgmr.msra.gmra.mxu0 %v855_v3  ;;  %v3327_v3 = vld [vmem:[#allocation11 + $0x10] sm:$0xff] }
 0x205   : > { %1596 = vmatmul.bf16.vlgmr.msra.gmra.mxu1 %v856_v4  ;;  %1793 = vmatpush.bf16.msra.mxu3 %v3312_v10  ;;  %v3343_v4 = vld [vmem:[#allocation11 + $0x50] sm:$0xff] }
 0x206   : > { %1893 = vmatpush.bf16.msrb.mxu0 %v3336_v53  ;;  %v3369_v53 = vld [vmem:[#allocation13 + $0xa0] sm:$0xff] }
 0x207   : > { %1733 = vmatpush.bf16.msra.mxu2 %v3319_v16  ;;  %1954 = vmatpush.bf16.msrb.mxu1 %v3328_v56  ;;  %v3377_v56 = vld [vmem:[#allocation11 + $0xe0] sm:$0xff] }
 0x209   : > { %1794 = vmatpush.bf16.msra.mxu3 %v3311_v13  ;;  %v3350_v13 = vld [vmem:[#allocation13 + $0x48] sm:$0xff] }
 0x20a   : > { %1894 = vmatpush.bf16.msrb.mxu0 %v3335_v0  ;;  %v3375_v0 = vld [vmem:[#allocation11 + $0xd0] sm:$0xff] }
 0x20b   : > { %1734 = vmatpush.bf16.msra.mxu2 %v3318_v20  ;;  %1955 = vmatpush.bf16.msrb.mxu1 %v3327_v3  ;;  %v3365_v3 = vld [vmem:[#allocation13 + $0x80] sm:$0xff] }
 0x20d   : > { %1795 = vmatpush.bf16.msra.mxu3 %v3310_v15 }
 0x20e   : > { %1895 = vmatpush.bf16.msrb.mxu0 %v3334_v14 }
 0x20f   : > { %1735 = vmatpush.bf16.msra.mxu2 %v3317_v21  ;;  %v3326_v21 = vld [vmem:[#allocation11 + $0x8] sm:$0xff] }
 0x210   : > { %1956 = vmatpush.bf16.msrb.mxu1 %v3326_v21 }
 0x211   : > { %1796 = vmatpush.bf16.msra.mxu3 %v3309_v17 }
 0x212   : > { %1896 = vmatpush.bf16.msrb.mxu0 %v3333_v37 }
 0x213   : > { %2069 = vmatpush.bf16.msrb.mxu2 %v3356_v25 }
 0x214   : > { %1797 = vmatmul.bf16.vlgmr.msra.gmra.mxu3 %v4137_v19 }
 0x215   : > { %2130 = vmatpush.bf16.msrb.mxu3 %v3348_v28  ;;  %1897 = vmatmul.bf16.vlgmr.msrb.gmra.mxu0 %v4135_v18 }
 0x217   : > { %2070 = vmatpush.bf16.msrb.mxu2 %v3355_v30 }
 0x219   : > { %2131 = vmatpush.bf16.msrb.mxu3 %v3347_v33 }
 0x21b   : > { %2071 = vmatpush.bf16.msrb.mxu2 %v3354_v36  ;;  %v3387_v36 = vld [vmem:[#allocation13 + $0xf0] sm:$0xff] }
 0x21d   : > { %2132 = vmatpush.bf16.msrb.mxu3 %v3346_v39  ;;  %v3372_v39 = vld [vmem:[#allocation13 + $0xb8] sm:$0xff] }
 0x21e   : > { %2250 = vmatpush.bf16.msra.mxu0 %v3372_v39  ;;  %v3520_v39 = vld [vmem:[%s4245_s10 + $0x3] ss:$0 sm:$0xff] }
 0x21f   : > { %2072 = vmatpush.bf16.msrb.mxu2 %v3353_v42  ;;  %v3380_v42 = vld [vmem:[#allocation11 + $0xf8] sm:$0xff] }
 0x221   : > { %2133 = vmatpush.bf16.msrb.mxu3 %v3345_v46  ;;  %v3379_v46 = vld [vmem:[#allocation11 + $0xf0] sm:$0xff] }
 0x222   : > { %2251 = vmatpush.bf16.msra.mxu0 %v3371_v43 }
 0x223   : > { %2073 = vmatpush.bf16.msrb.mxu2 %v3352_v52  ;;  %v3378_v52 = vld [vmem:[#allocation11 + $0xe8] sm:$0xff] }
 0x225   : > { %2134 = vmatpush.bf16.msrb.mxu3 %v3344_v57  ;;  %v3368_v57 = vld [vmem:[#allocation13 + $0x98] sm:$0xff] }
 0x227   : > { %2074 = vmatpush.bf16.msrb.mxu2 %v3351_v63  ;;  %v3381_v63 = vld [vmem:[#allocation13 + $0xc0] sm:$0xff] }
 0x229   : > { %2135 = vmatpush.bf16.msrb.mxu3 %v3343_v4  ;;  %v3357_v4 = vld [vmem:[#allocation11 + $0x80] sm:$0xff] }
 0x22b   : > { %2075 = vmatpush.bf16.msrb.mxu2 %v3350_v13 }
 0x271   : > { %v1292_v22 = vpop.f32.mrf.mxu0 }
 0x272   : > { %v1353_v23 = vpop.f32.mrf.mxu1  ;;  %v1619_v44 = vpack.c.bf16 %v1292_v22, %v1292_v22  ;;  %v3342_v22 = vld [vmem:[#allocation11 + $0x48] sm:$0xff] }
 0x273   : > { %v1620_v49 = vpack.c.bf16 %v1353_v23, %v1353_v23  ;;  %2136 = vmatpush.bf16.msrb.mxu3 %v3342_v22 }
 0x274   : > { %v1651_v54 = vunpack.c.l.b16 %v1619_v44  ;;  %v3363_v44 = vld [vmem:[#allocation11 + $0xb0] sm:$0xff] }
 0x275   : > { %v1170_v29 = vpop.f32.mrf.mxu2  ;;  %v1652_v59 = vunpack.c.l.b16 %v1620_v49  ;;  %v3370_v49 = vld [vmem:[#allocation13 + $0xa8] sm:$0xff] }
 0x276   : > { %v1617_v47 = vpack.c.bf16 %v1170_v29, %v1170_v29  ;;  %v1660_v12 = vrot.slane %v1651_v54, 6  ;;  %v3349_v29 = vld [vmem:[#allocation13 + $0x40] sm:$0xff]  ;;  %2252 = vmatpush.bf16.msra.mxu0 %v3370_v49 }
 0x277   : > { %v1231_v34 = vpop.f32.mrf.mxu3  ;;  %v1663_v9 = vrot.slane %v1652_v59, 5  ;;  %2076 = vmatpush.bf16.msrb.mxu2 %v3349_v29  ;;  %2137 = vmatpush.bf16.msrb.mxu3 %v3341_v38  ;;  %v3361_v54 = vld [vmem:[#allocation11 + $0xa0] sm:$0xff]  ;;  %v3382_v59 = vld [vmem:[#allocation13 + $0xc8] sm:$0xff] }
 0x278   : > { %v1618_v19 = vpack.c.bf16 %v1231_v34, %v1231_v34  ;;  %v1649_v58 = vunpack.c.l.b16 %v1617_v47  ;;  %v3518_v29 = vld [vmem:[%s4245_s10 + $0x1] ss:$0 sm:$0xff] }
 0x279   : > { %v1294_v35 = vpop.f32.mrf.mxu0 }
 0x27a   : > { %v1355_v24 = vpop.f32.mrf.mxu1  ;;  %v1650_v40 = vunpack.c.l.b16 %v1618_v19  ;;  %v3388_v19 = vld [vmem:[#allocation13 + $0xf8] sm:$0xff]  ;;  %2253 = vmatpush.bf16.msra.mxu0 %v3369_v53  ;;  %v3878_v53 = vmov -inf  }
 0x27b   : > { %v3325_v24 = vld [vmem:[#allocation11] sm:$0xff]  ;;  %2474 = vmatpush.bf16.msra.mxu3 %v3380_v42  ;;  %2522 = vst.msk [vmem:[#allocation3] sm:$0xff] %vm2521_vm7, %v3878_v53 }
 0x27c   : > { %v1657_v50 = vrot.slane %v1650_v40, 7  ;;  %v3364_v40 = vld [vmem:[#allocation11 + $0xb8] sm:$0xff]  ;;  %1957 = vmatpush.bf16.msrb.mxu1 %v3325_v24 }
 0x27d   : > { %v1172_v41 = vpop.f32.mrf.mxu2 }
 0x27e   : > { %v1659_v60 = vsel %vm1658_vm0, %v1657_v50, %v1649_v58  ;;  %v3386_v41 = vld [vmem:[#allocation13 + $0xe8] sm:$0xff]  ;;  %v3360_v58 = vld [vmem:[#allocation11 + $0x98] sm:$0xff]  ;;  %2254 = vmatpush.bf16.msra.mxu0 %v3368_v57 }
 0x27f   : > { %v1233_v48 = vpop.f32.mrf.mxu3  ;;  %v1662_v6 = vsel %vm1661_vm1, %v1660_v12, %v1659_v60  ;;  %2475 = vmatpush.bf16.msra.mxu3 %v3379_v46  ;;  %v3362_v50 = vld [vmem:[#allocation11 + $0xa8] sm:$0xff]  ;;  %v3376_v60 = vld [vmem:[#allocation11 + $0xd8] sm:$0xff] }
 0x280   : > { %v1665_v23 = vsel %vm1664_vm2, %v1663_v9, %v1662_v6  ;;  %2311 = vmatpush.bf16.msra.mxu1 %v3364_v40  ;;  %v3366_v12 = vld [vmem:[#allocation13 + $0x88] sm:$0xff] }
 0x281   : > { %v1536_v51 = vpop.f32.mrf.mxu0  ;;  %v3516_v6 = vld [vmem:[%s4242_s7] ss:$0 sm:$0xff] }
 0x282   : > { %v1597_v55 = vpop.f32.mrf.mxu1  ;;  %v1623_v61 = vpack.c.bf16 %v1536_v51, %v1536_v51  ;;  %v3384_v51 = vld [vmem:[#allocation13 + $0xd8] sm:$0xff] }
 0x283   : > { %v1624_v1 = vpack.c.bf16 %v1597_v55, %v1597_v55  ;;  %2476 = vmatpush.bf16.msra.mxu3 %v3378_v52  ;;  %v3383_v55 = vld [vmem:[#allocation13 + $0xd0] sm:$0xff] }
 0x284   : > { %v1655_v10 = vunpack.c.l.b16 %v1623_v61  ;;  %2312 = vmatpush.bf16.msra.mxu1 %v3363_v44  ;;  %v3367_v61 = vld [vmem:[#allocation13 + $0x90] sm:$0xff] }
 0x285   : > { %v1414_v62 = vpop.f32.mrf.mxu2  ;;  %v1656_v15 = vunpack.c.l.b16 %v1624_v1  ;;  %2255 = vmatpush.bf16.msra.mxu0 %v3367_v61  ;;  %v3358_v1 = vld [vmem:[#allocation11 + $0x88] sm:$0xff] }
 0x286   : > { %v1621_v2 = vpack.c.bf16 %v1414_v62, %v1414_v62  ;;  %v1672_v27 = vrot.slane %v1655_v10, 2  ;;  %v3359_v62 = vld [vmem:[#allocation11 + $0x90] sm:$0xff] }
 0x287   : > { %v1475_v5 = vpop.f32.mrf.mxu3  ;;  %v1675_v30 = vrot.slane %v1656_v15, 1  ;;  %2477 = vmatpush.bf16.msra.mxu3 %v3377_v56  ;;  %v3879_v56 = vmov 0.0  }
 0x288   : > { %v1653_v7 = vunpack.c.l.b16 %v1621_v2  ;;  %v1622_v8 = vpack.c.bf16 %v1475_v5, %v1475_v5  ;;  %2313 = vmatpush.bf16.msra.mxu1 %v3362_v50  ;;  %v3374_v2 = vld [vmem:[#allocation11 + $0xc8] sm:$0xff]  ;;  %v3373_v5 = vld [vmem:[#allocation11 + $0xc0] sm:$0xff]  ;;  %2523 = vst.msk [vmem:[#allocation4] sm:$0xff] %vm2521_vm7, %v3879_v56 }
 0x289   : > { %v1538_v11 = vpop.f32.mrf.mxu0  ;;  %2256 = vmatpush.bf16.msra.mxu0 %v3366_v12 }
 0x28a   : > { %v1666_v16 = vrot.slane %v1653_v7, 4  ;;  %v1654_v17 = vunpack.c.l.b16 %v1622_v8  ;;  %v1599_v20 = vpop.f32.mrf.mxu1 }
 0x28b   : > { %2478 = vmatpush.bf16.msra.mxu3 %v3376_v60 }
 0x28c   : > { %v1668_v25 = vsel %vm1667_vm3, %v1666_v16, %v1665_v23  ;;  %v1669_v26 = vrot.slane %v1654_v17, 3  ;;  %2314 = vmatpush.bf16.msra.mxu1 %v3361_v54  ;;  %v3517_v23 = vld [vmem:[%s4245_s10] ss:$0 sm:$0xff] }
 0x28d   : > { %v1416_v28 = vpop.f32.mrf.mxu2  ;;  %2257 = vmatpush.bf16.msra.mxu0 %v3365_v3 }
 0x28e   : > { %v1671_v31 = vsel %vm1670_vm4, %v1669_v26, %v1668_v25 }
 0x28f   : > { %v1674_v32 = vsel %vm1673_vm5, %v1672_v27, %v1671_v31  ;;  %v1477_v33 = vpop.f32.mrf.mxu3  ;;  %2479 = vmatpush.bf16.msra.mxu3 %v3375_v0 }
 0x290   : > { %v1677_v34 = vsel %vm1676_vm6, %v1675_v30, %v1674_v32  ;;  %2315 = vmatpush.bf16.msra.mxu1 %v3360_v58  ;;  %2258 = vmatmul.bf16.vlgmr.msra.gmra.mxu0 %v4135_v18 }
 0x291   : > { %v1678_v35 = vpack.c.b16 %v1677_v34, %v1677_v34 }
 0x292   : > { %v1898_v16 = vpop.f32.mrf.mxu0 }
 0x293   : > { %1736 = vmatmul.bf16.vlgmr.msra.gmra.mxu2 %v1678_v35  ;;  %2480 = vmatpush.bf16.msra.mxu3 %v3374_v2 }
 0x294   : > { %2413 = vmatpush.bf16.msra.mxu2 %v3388_v19  ;;  %2316 = vmatpush.bf16.msra.mxu1 %v3359_v62 }
 0x297   : > { %v1798_v47 = vpop.f32.mrf.mxu3  ;;  %2481 = vmatpush.bf16.msra.mxu3 %v3373_v5 }
 0x298   : > { %2414 = vmatpush.bf16.msra.mxu2 %v3387_v36  ;;  %2317 = vmatpush.bf16.msra.mxu1 %v3358_v1 }
 0x29a   : > { %v1900_v17 = vpop.f32.mrf.mxu0 }
 0x29c   : > { %2415 = vmatpush.bf16.msra.mxu2 %v3386_v41  ;;  %2318 = vmatpush.bf16.msra.mxu1 %v3357_v4  ;;  %v662_v4 = vld [vmem:[%s4237_s2] sm:$0xff] }
 0x29f   : > { %v1800_v48 = vpop.f32.mrf.mxu3 }
 0x2a0   : > { %2416 = vmatpush.bf16.msra.mxu2 %v3385_v45  ;;  %v3519_v45 = vld [vmem:[%s4245_s10 + $0x2] ss:$0 sm:$0xff] }
 0x2a3   : > { %2077 = vmatmul.bf16.vlgmr.msrb.gmra.mxu2 %v4135_v18 }
 0x2a4   : > { %2417 = vmatpush.bf16.msra.mxu2 %v3384_v51 }
 0x2a8   : > { %2418 = vmatpush.bf16.msra.mxu2 %v3383_v55 }
 0x2ac   : > { %2419 = vmatpush.bf16.msra.mxu2 %v3382_v59 }
 0x2b0   : > { %2420 = vmatpush.bf16.msra.mxu2 %v3381_v63 }
 0x2b3   : > { %2421 = vmatmul.bf16.vlgmr.msra.gmra.mxu2 %v4135_v18 }
 0x30d   : > { %v2259_v18 = vpop.f32.mrf.mxu0 }
 0x315   : > { %v2261_v22 = vpop.f32.mrf.mxu0 }
 0x316   : > { %v1737_v7 = vpop.f32.mrf.mxu2 }
 0x317   : > { %v1799_v8 = vadd.f32 %v1798_v47, %v1737_v7 }
 0x319   : > { %v1806_v9 = vadd.f32 %v3516_v6, %v1799_v8 }
 0x31b   : > { %v1807_v10 = vmax.f32 %v1806_v9, 0.0 }
 0x31d   : > { %v1808_v11 = vpack.c.bf16 %v1807_v10, %v1807_v10 }
 0x31e   : > { %v1739_v13 = vpop.f32.mrf.mxu2 }
 0x31f   : > { %1958 = vmatmul.bf16.vlgmr.msrb.gmra.mxu1 %v1808_v11  ;;  %2138 = vmatmul.bf16.vlgmr.msrb.gmra.mxu3 %v1808_v11 }
 0x326   : > { %v2078_v14 = vpop.f32.mrf.mxu2 }
 0x32e   : > { %v2080_v15 = vpop.f32.mrf.mxu2 }
 0x32f   : > { %2319 = vmatmul.bf16.vlgmr.msra.gmra.mxu1 %v1808_v11  ;;  %2482 = vmatmul.bf16.vlgmr.msra.gmra.mxu3 %v1808_v11 }
 0x336   : > { %v2422_v20 = vpop.f32.mrf.mxu2 }
 0x33e   : > { %v2424_v21 = vpop.f32.mrf.mxu2 }
 0x39c   : > { %v1959_v25 = vpop.f32.mrf.mxu1 }
 0x39d   : > { %v1960_v26 = vadd.f32 %v1959_v25, %v1898_v16 }
 0x39f   : > { %v1967_v27 = vadd.f32 %v3517_v23, %v1960_v26 }
 0x3a1   : > { %v3054_v28 = vmul.f32 -1.442695, %v1967_v27 }
 0x3a2   : > { %v2139_v30 = vpop.f32.mrf.mxu3 }
 0x3a3   : > { %3525 = vpow2.f32 %v3054_v28  ;;  %v2140_v31 = vadd.f32 %v2139_v30, %v2078_v14 }
 0x3a4   : > { %v1961_v32 = vpop.f32.mrf.mxu1 }
 0x3a5   : > { %v2148_v33 = vadd.f32 %v3518_v29, %v2140_v31 }
 0x3a7   : > { %v3120_v34 = vmul.f32 -1.442695, %v2148_v33 }
 0x3a9   : > { %v3526_v19 = vpop.eup %3525  ;;  %3527 = vpow2.f32 %v3120_v34 }
 0x3aa   : > { %v1971_v35 = vadd.f32 1.0, %v3526_v19  ;;  %v2141_v36 = vpop.f32.mrf.mxu3 }
 0x3ac   : > { %3529 = vrcp.f32 %v1971_v35  ;;  %v2320_v37 = vpop.f32.mrf.mxu1  ;;  %v1983_v57 = vand.u32 2147483648, %v1971_v35  ;;  %vm1977_vm9 = vweird.f32 %v1971_v35  ;;  %v1981_v60 = vand.u32 2147483647, %v1971_v35 }
 0x3ad   : > { %v2321_v44 = vadd.f32 %v2320_v37, %v2259_v18 }
 0x3ae   : > { %v1984_v12 = vor.u32 1.1754944e-38, %v1983_v57  ;;  %vm1982_vm13 = vcmp.eq.f32.partialorder %v1981_v60, 8.507059e+37 }
 0x3af   : > { %v3528_v24 = vpop.eup %3527  ;;  %v2329_v52 = vadd.f32 %v3519_v45, %v2321_v44 }
 0x3b0   : > { %v2152_v38 = vadd.f32 1.0, %v3528_v24 }
 0x3b2   : > { %v3530_v40 = vpop.eup %3529  ;;  %3531 = vrcp.f32 %v2152_v38  ;;  %v2483_v41 = vpop.f32.mrf.mxu3  ;;  %v2164_v61 = vand.u32 2147483648, %v2152_v38  ;;  %v2162_v0 = vand.u32 2147483647, %v2152_v38  ;;  %vm2158_vm12 = vweird.f32 %v2152_v38 }
 0x3b3   : > { %v1973_v42 = vmul.f32 %v3530_v40, %v1971_v35  ;;  %v2484_v43 = vadd.f32 %v2483_v41, %v2422_v20  ;;  %vm1978_vm8 = vweird.f32 %v3530_v40 }
 0x3b4   : > { %v2322_v46 = vpop.f32.mrf.mxu1  ;;  %vm1979_vm10 = vmor %vm1977_vm9, %vm1978_vm8  ;;  %v2165_v3 = vor.u32 1.1754944e-38, %v2164_v61  ;;  %vm2163_vm15 = vcmp.eq.f32.partialorder %v2162_v0, 8.507059e+37 }
 0x3b5   : > { %v1974_v47 = vsub.f32 1.0, %v1973_v42  ;;  %v2492_v48 = vadd.f32 %v3520_v39, %v2484_v43 }
 0x3b7   : > { %v1975_v49 = vmul.f32 %v3530_v40, %v1974_v47  ;;  %v3251_v50 = vmul.f32 -1.442695, %v2492_v48 }
 0x3b8   : > { %v3532_v51 = vpop.eup %3531 }
 0x3b9   : > { %v2154_v54 = vmul.f32 %v3532_v51, %v2152_v38  ;;  %v1976_v55 = vadd.f32 %v3530_v40, %v1975_v49  ;;  %3533 = vpow2.f32 %v3251_v50  ;;  %vm2159_vm11 = vweird.f32 %v3532_v51 }
 0x3ba   : > { %v2485_v58 = vpop.f32.mrf.mxu3  ;;  %3535 = vtanh.f32 %v2329_v52  ;;  %vm2160_vm14 = vmor %vm2158_vm12, %vm2159_vm11 }
 0x3bb   : > { %v2155_v59 = vsub.f32 1.0, %v2154_v54  ;;  %v1980_v63 = vsel %vm1979_vm10, %v3530_v40, %v1976_v55 }
 0x3bc   : > { %v1985_v5 = vsel %vm1982_vm13, %v1984_v12, %v1980_v63 }
 0x3bd   : > { %v2156_v62 = vmul.f32 %v3532_v51, %v2155_v59 }
 0x3bf   : > { %v3534_v1 = vpop.eup %3533  ;;  %v2157_v2 = vadd.f32 %v3532_v51, %v2156_v62 }
 0x3c0   : > { %v2496_v6 = vadd.f32 1.0, %v3534_v1  ;;  %v3536_v8 = vpop.eup %3535 }
 0x3c1   : > { %v2161_v7 = vsel %vm2160_vm14, %v3532_v51, %v2157_v2  ;;  %v2513_v11 = vmul.f32 %v3536_v8, %v1985_v5 }
 0x3c2   : > { %v2166_v9 = vsel %vm2163_vm15, %v2165_v3, %v2161_v7  ;;  %3537 = vrcp.f32 %v2496_v6  ;;  %v2508_v17 = vand.u32 2147483648, %v2496_v6  ;;  %v2506_v18 = vand.u32 2147483647, %v2496_v6 }
 0x3c3   : > { %v2512_v10 = vmul.f32 %v2166_v9, %v662_v4  ;;  %vm2502_vm1 = vweird.f32 %v2496_v6 }
 0x3c4   : > { %v2509_v22 = vor.u32 1.1754944e-38, %v2508_v17  ;;  %vm2507_vm3 = vcmp.eq.f32.partialorder %v2506_v18, 8.507059e+37 }
 0x3c5   : > { %v2514_v13 = vadd.f32 %v2513_v11, %v2512_v10 }
 0x3c7   : > { %2517 = vst [vmem:[#allocation17] sm:$0xff] %v2514_v13  ;;  %3539 = vtanh.f32 %v2514_v13 }
 0x3c8   : > { %v3538_v14 = vpop.eup %3537 }
 0x3c9   : > { %v2498_v15 = vmul.f32 %v3538_v14, %v2496_v6  ;;  %vm2503_vm0 = vweird.f32 %v3538_v14 }
 0x3ca   : > { %vm2504_vm2 = vmor %vm2502_vm1, %vm2503_vm0 }
 0x3cb   : > { %v2499_v16 = vsub.f32 1.0, %v2498_v15 }
 0x3cd   : > { %v2500_v20 = vmul.f32 %v3538_v14, %v2499_v16  ;;  %v3540_v25 = vpop.eup %3539 }
 0x3cf   : > { %v2501_v21 = vadd.f32 %v3538_v14, %v2500_v20 }
 0x3d1   : > { %v2505_v23 = vsel %vm2504_vm2, %v3538_v14, %v2501_v21 }
 0x3d2   : > { %v2510_v26 = vsel %vm2507_vm3, %v2509_v22, %v2505_v23 }
 0x3d3   : > { %v2516_v27 = vmul.f32 %v3540_v25, %v2510_v26 }
 0x3d5   : > { %2518 = vst [vmem:[#allocation16] sm:$0xff] %v2516_v27  ;;  %v2519_v28 = vpack.c.bf16 %v2516_v27, %v2516_v27 }
 0x3d7   : > { %2520 = vst [vmem:[#allocation2] sm:$0xf] %v2519_v28 }
 0x3d8 PF: > { %v3396_v29 = vld [vmem:[%s4107_s0 + $0x38] sm:$0xff]  ;;  %v3395_v30 = vld [vmem:[%s4107_s0 + $0x30] sm:$0xff]  ;;  %v3394_v31 = vld [vmem:[%s4107_s0 + $0x28] sm:$0xff]  ;;  %v3880_v40 = vmov 0   ;;  %vm2627_vm4 = vcmask 7168   ;;  %p3284_p1 = scmp.ne.s32.totalorder %s3993_s28, 1 }
 0x3d9   : > { %2593 = vmatpush.bf16.msra.mxu0 %v3396_v29  ;;  %v3393_v32 = vld [vmem:[%s4107_s0 + $0x20] sm:$0xff]  ;;  %v3392_v33 = vld [vmem:[%s4107_s0 + $0x18] sm:$0xff]  ;;  %v3391_v34 = vld [vmem:[%s4107_s0 + $0x10] sm:$0xff]  ;;  %3541 = vset.pattern.permute.xlu0 %v3880_v40 }
 0x3da   : > { %v3390_v19 = vld [vmem:[%s4107_s0 + $0x8] sm:$0xff]  ;;  %v3389_v35 = vld [vmem:[%s4107_s0] sm:$0xff]  ;;  %v2607_v41 = vld [vmem:[#allocation3] sm:$0xff] }
 0x3db   : > { %v3542_v37 = vld [vmem:[%s651_s8] ss:$0 sm:$0xff]  ;;  %v2611_v51 = vld [vmem:[#allocation4] sm:$0xff] }
 0x3dd   : > { %2594 = vmatpush.bf16.msra.mxu0 %v3395_v30 }
 0x3de   : > { %v2524_v36 = vld [vmem:[#allocation2] sm:$0xf] }
 0x3e1   : > { %2595 = vmatpush.bf16.msra.mxu0 %v3394_v31 }
 0x3e5   : > { %2596 = vmatpush.bf16.msra.mxu0 %v3393_v32 }
 0x3e9   : > { %2597 = vmatpush.bf16.msra.mxu0 %v3392_v33 }
 0x3ed   : > { %2598 = vmatpush.bf16.msra.mxu0 %v3391_v34 }
 0x3f1   : > { %2599 = vmatpush.bf16.msra.mxu0 %v3390_v19 }
 0x3f5   : > { %2600 = vmatpush.bf16.msra.mxu0 %v3389_v35 }
 0x3f8   : > { %2601 = vmatmul.bf16.vlgmr.msra.gmra.mxu0 %v2524_v36 }
 0x475   : > { %v2602_v24 = vpop.f32.mrf.mxu0 }
 0x476   : > { %v2603_v38 = vadd.f32 %v3542_v37, %v2602_v24 }
 0x478   : > { %2606 = vst [vmem:[%s4125_s27] sm:$0xff] %v2603_v38  ;;  %2608 = vmax.xlane.f32.xlu0 %v2603_v38 }
 0x47d   : > { %v2604_v39 = vpop.f32.mrf.mxu0 }
 0x4eb   : > { %v2609_v42 = vpop.xlane.xlu0 %2608 }
 0x4ec   : > { %v2610_v43 = vmax.f32 %v2607_v41, %v2609_v42 }
 0x4ee   : > { %v2612_v44 = vsub.f32 %v2607_v41, %v2610_v43  ;;  %2629 = vst.msk [vmem:[#allocation3] sm:$0xff] %vm2627_vm4, %v2610_v43  ;;  %2618 = vperm.xlu0 %3541, %v2610_v43  }
 0x4f0   : > { %v2613_v49 = vmul.f32 1.442695, %v2612_v44 }
 0x560   : > { %v2619_v45 = vpop.permute.xlu0 %2618 }
 0x561   : > { %v2621_v46 = vsub.f32 %v2603_v38, %v2619_v45 }
 0x563   : > { %v2622_v47 = vmul.f32 1.442695, %v2621_v46 }
 0x565   : > { %3543 = vpow2.f32 %v2622_v47 }
 0x566   : > { %3545 = vpow2.f32 %v2613_v49 }
 0x56b   : > { %v3544_v48 = vpop.eup %3543 }
 0x56c   : > { %2624 = vadd.xlane.f32.xlu1 %v3544_v48  ;;  %v3546_v50 = vpop.eup %3545 }
 0x56d   : > { %v2615_v52 = vmul.f32 %v3546_v50, %v2611_v51 }
 0x5de   : > { %2633 = sbr.rel (%p3284_p1) target bundleno = 1526 (0x5f6), region = 104 }
 0x5df   : > { %v2625_v53 = vpop.xlane.xlu1 %2624 }
 0x5e0   : > { %v2626_v54 = vadd.f32 %v2625_v53, %v2615_v52 }
 0x5e2   : > { %2628 = vst.msk [vmem:[#allocation4] sm:$0xff] %vm2627_vm4, %v2626_v54 }
 0x5e3   : > { %v2634_v57 = vld [vmem:[#allocation3] sm:$0xff] }
 0x5e9   : > { %v2635_v55 = vld [vmem:[#allocation4] sm:$0xff] }
 0x5ea   : > { %3547 = vlog2.f32 %v2635_v55 }
 0x5f0   : > { %v3548_v56 = vpop.eup %3547 }
 0x5f1   : > { %v2637_v58 = vmul.f32 0.6931472, %v3548_v56 }
 0x5f3   : > { %v2638_v59 = vadd.f32 %v2637_v58, %v2634_v57 }
 0x5f5   : > { %2639 = vst.msk [vmem:[%s4249_s14] sm:$0xff] %vm2627_vm4, %v2638_v59 }
 0x5f6 PF: > { %p3462_p4 = scmp.eq.s32.totalorder %s3993_s28, 1  ;;  %s3881_s8 = smov [#allocation17]  }
 0x5f7   : > { %s2668_s27 = sshll.u32 %s3881_s8, 4  ;;  %s4276_s21 = sld [smem:[#allocation34_spill]]  ;;  %s2669_s27 = int_to_ptr.vmem [resolvable:$true] %s2668_s27 }
 0x5f8   : > { %s4277_s29 = sld [smem:[#allocation33_spill]]  ;;  %s3882_s3 = smov [#allocation16]  }
 0x5f9   : > { %s2656_s24 = sshll.u32 %s3882_s3, 4  ;;  %s3883_s22 = smov [#allocation19]   ;;  %s2657_s24 = int_to_ptr.vmem [resolvable:$true] %s2656_s24 }
 0x5fa   : > { %s2680_s20 = sshll.u32 %s3883_s22, 4  ;;  %s4278_s0 = sld [smem:[#allocation35_spill]]  ;;  %s2681_s20 = int_to_ptr.vmem [resolvable:$true] %s2680_s20 }
 0x5fd   : > { %s2670_s23 = sshll.u32 %s4276_s21, 4  ;;  %s2671_s23 = int_to_ptr.hbm [resolvable:$true] %s2670_s23 }
 0x5fe   : > { %3422 = dma.vmem_to_hbm [thread:$0]  (%p3462_p4), %s2669_s27, 128, %s2671_s23, [#allocation18]  }
 0x5ff   : > { %s2658_s15 = sshll.u32 %s4277_s29, 4  ;;  %s2659_s15 = int_to_ptr.hbm [resolvable:$true] %s2658_s15 }
 0x600   : > { %3420 = dma.vmem_to_hbm [thread:$0]  (%p3462_p4), %s2657_s24, 128, %s2659_s15, [#allocation7]  }
 0x601   : > { %s2682_s30 = sshll.u32 %s4278_s0, 4  ;;  %s2683_s30 = int_to_ptr.hbm [resolvable:$true] %s2682_s30 }
 0x602   : > { %3424 = dma.vmem_to_hbm [thread:$0]  (%p3462_p4), %s2681_s20, 128, %s2683_s30, [#allocation18]  }
 0x603   : > { %3846 = dma.done.wait (%p3462_p4), [#allocation7], 128  }
 0x604   : > { %3848 = vsyncadd (%p3462_p4), [#allocation7], 4294967168 }
 0x605   : > { %3850 = dma.done.wait (%p3462_p4), [#allocation18], 256  }
 0x606   : > { %3852 = vsyncadd (%p3462_p4), [#allocation18], 4294967040 }
 0x607 PF: > { %p33_p5 = scmp.ge.s32.totalorder %s4053_s18, 4   ;;  %s4279_s24 = smov %s3859_s25 }
 0x608   : > { %s4280_s25 = smov %s3863_s26  ;;  %s4281_s26 = smov %s4068_s1 }
 0x609   : > { %s4282_s27 = smov %s4053_s18  ;;  %35 = sbr.rel (!%p33_p5) target bundleno = 19 (0x13), region = 186 }
 0x60e   :  { %2716 = vsyncpa [#allocation6], 1 }
 0x60f   :  { %2718 = vsyncpa [#allocation6 + $0x1], 1 }
 0x610   :  { %2719 = vsyncpa [#allocation9], 1 }
 0x611   :  { %2720 = vsyncpa [#allocation12], 1 }
 0x612   :  { %2721 = vsyncpa [#allocation15], 1 }
 0x613   :  { %2723 = vsyncpa [#allocation15 + $0x1], 1 }
 0x614   :  { %2724 = vsyncpa [#allocation7], 1 }
 0x615   :  { %2726 = vsyncpa [#allocation7 + $0x1], 1 }
 0x616   :  { %2727 = vsyncpa [#allocation18], 1 }

</bundles_post_ra>
